<compile_context>
chip_gen: v7x
topology: tpu7x:2x2x1
jax: 0.10.0
libtpu: 0.0.40
codegen_flags: <defaults>
</compile_context>

<pallas_src>
import functools
import math

import jax
import jax.numpy as jnp
from jax.experimental import pallas as pl
from jax.experimental.pallas import tpu as pltpu

EPS = 1e-5
GELU_C = math.sqrt(2.0 / math.pi)
LANES = 128


def _round_up(x, m):
    return (x + m - 1) // m * m


# ----------------------------- Pallas kernels --------------------------------
def stats_kernel(patches_ref, w2_ref, stats_ref):
    """Pass 1: per-row-tile, per-channel sum and sum-of-squares of Y."""
    # (row_tile, Kdim) @ (Kdim, Cpad) -> f32 on the MXU (bf16 inputs, DEFAULT
    # precision, f32 accumulation).
    y = jnp.dot(patches_ref[...], w2_ref[...], preferred_element_type=jnp.float32)
    s1 = jnp.sum(y, axis=0, keepdims=True)        # (1, Cpad)
    s2 = jnp.sum(y * y, axis=0, keepdims=True)    # (1, Cpad)
    pad = jnp.zeros((6, y.shape[1]), jnp.float32)
    # Rows: 0 = sum, 1 = sumsq, 2..7 = zero (room for gamma/beta packing later).
    stats_ref[0, :, :] = jnp.concatenate([s1, s2, pad], axis=0)


def apply_kernel(patches_ref, w2_ref, params_ref, out_ref, *, inv_n):
    """Pass 2: recompute the cheap matmul, apply BatchNorm + NewGELU."""
    y = jnp.dot(patches_ref[...], w2_ref[...], preferred_element_type=jnp.float32)

    # params rows: 0 = sum(Y), 1 = sum(Y^2), 2 = gamma (padded), 3 = beta (padded)
    mean = params_ref[0:1, :] * inv_n                        # (1, Cpad)
    ex2 = params_ref[1:2, :] * inv_n
    var = jnp.maximum(ex2 - mean * mean, 0.0)                # biased variance
    inv_std = jax.lax.rsqrt(var + EPS)
    scale = params_ref[2:3, :] * inv_std                     # gamma / sqrt(var+eps)
    shift = params_ref[3:4, :] - mean * scale                # beta - mean*scale

    yn = y * scale + shift                                   # BN (train-mode stats)
    # NewGELU (exact OpenAI tanh formulation), all in f32 on the VPU/EUP.
    out_ref[...] = 0.5 * yn * (1.0 + jnp.tanh(GELU_C * (yn + 0.044715 * yn * yn * yn)))


# ---------------------------------- glue --------------------------------------
def _im2col_for_deconv(x, k, s):
    """im2col patches realizing ConvTranspose2d(kernel=k, stride=s, pad=0)."""
    N, Cin, H, W = x.shape
    Hu, Wu = (H - 1) * s + 1, (W - 1) * s + 1
    x_up = jnp.zeros((N, Cin, Hu, Wu), x.dtype).at[:, :, ::s, ::s].set(x)
    p = k - 1
    x_pad = jnp.pad(x_up, ((0, 0), (0, 0), (p, p), (p, p)))
    Hout, Wout = Hu + p, Wu + p                      # = (H-1)*s + k

    cols = []
    for kh in range(k):
        for kw in range(k):
            cols.append(x_pad[:, :, kh:kh + Hout, kw:kw + Wout])  # (N,Cin,Hout,Wout)
    pat = jnp.stack(cols, axis=-1)                   # (N, Cin, Hout, Wout, k*k)
    pat = pat.transpose(0, 2, 3, 1, 4)               # (N, Hout, Wout, Cin, k*k)
    pat = pat.reshape(N * Hout * Wout, Cin * k * k)
    return pat, Hout, Wout


@functools.partial(jax.jit, static_argnames=("kernel_size", "stride", "row_tile"))
def decoder_block(x, weight, gamma, beta, *, kernel_size, stride, row_tile=512):
    """x: (N, Cin, H, W);  weight: (Cin, Cout, k, k) as in nn.ConvTranspose2d."""
    N, Cin, H, W = x.shape
    Cout = weight.shape[1]
    k, s = kernel_size, stride
    kdim = Cin * k * k

    patches, Hout, Wout = _im2col_for_deconv(x, k, s)
    rows = N * Hout * Wout
    rows_pad = _round_up(rows, row_tile)
    num_tiles = rows_pad // row_tile
    cpad = _round_up(Cout, LANES)                    # lane-dense output channels

    # bf16 MXU inputs (halves dominant HBM traffic; DEFAULT precision rounds to
    # bf16 at the MXU anyway). Pad rows with zeros (no effect on BN sums).
    patches_p = jnp.zeros((rows_pad, kdim), jnp.bfloat16).at[:rows].set(
        patches.astype(jnp.bfloat16))
    # Flipped kernel laid out to match the patch column order (ci major, tap minor),
    # Cout zero-padded to a multiple of 128 lanes.
    w_flip = weight[:, :, ::-1, ::-1]                              # (Cin, Cout, k, k)
    w2 = w_flip.transpose(0, 2, 3, 1).reshape(kdim, Cout)
    w2_p = jnp.zeros((kdim, cpad), jnp.bfloat16).at[:, :Cout].set(
        w2.astype(jnp.bfloat16))

    cparams = pltpu.CompilerParams(
        dimension_semantics=("parallel",),           # v7x megacore splits row tiles
        vmem_limit_bytes=32 * 1024 * 1024,           # explicit: safe on v5e/v6e/v7x
    )

    # ---- pass 1: per-tile partial BN statistics (sum / sum of squares) ----
    partial_stats = pl.pallas_call(
        stats_kernel,
        out_shape=jax.ShapeDtypeStruct((num_tiles, 8, cpad), jnp.float32),
        grid=(num_tiles,),
        in_specs=[
            pl.BlockSpec((row_tile, kdim), lambda i: (i, 0)),
            pl.BlockSpec((kdim, cpad), lambda i: (0, 0)),
        ],
        out_specs=pl.BlockSpec((1, 8, cpad), lambda i: (i, 0, 0)),
        compiler_params=cparams,
    )(patches_p, w2_p)

    # Tiny cross-tile (and cross-core) reduction of the partial stats, then pack
    # sum / sumsq / gamma / beta into a single (8, Cpad) per-channel slab.
    params = (
        jnp.sum(partial_stats, axis=0)               # rows 0/1 = sum / sumsq
        .at[2, :Cout].set(gamma.astype(jnp.float32))
        .at[3, :Cout].set(beta.astype(jnp.float32))
    )

    # ---- pass 2: recompute matmul, apply BN + NewGELU, lane-dense store ----
    out_flat = pl.pallas_call(
        functools.partial(apply_kernel, inv_n=1.0 / float(rows)),
        out_shape=jax.ShapeDtypeStruct((rows_pad, cpad), jnp.float32),
        grid=(num_tiles,),
        in_specs=[
            pl.BlockSpec((row_tile, kdim), lambda i: (i, 0)),
            pl.BlockSpec((kdim, cpad), lambda i: (0, 0)),
            pl.BlockSpec((8, cpad), lambda i: (0, 0)),
        ],
        out_specs=pl.BlockSpec((row_tile, cpad), lambda i: (i, 0)),
        compiler_params=cparams,
    )(patches_p, w2_p, params)

    # Drop row / channel padding; rows are (N, Hout, Wout) flattened -> NCHW.
    out = out_flat[:rows, :Cout].reshape(N, Hout, Wout, Cout)
    return out.transpose(0, 3, 1, 2)


# ----------------------------- pure-JAX reference -----------------------------
def decoder_block_ref(x, weight, gamma, beta, *, kernel_size, stride):
    N, Cin, H, W = x.shape
    Cout = weight.shape[1]
    k, s = kernel_size, stride
    Hout = (H - 1) * s + k
    Wout = (W - 1) * s + k
    out = jnp.zeros((N, Cout, Hout, Wout), jnp.float32)
    for a in range(k):
        for b in range(k):
            contrib = jnp.einsum('nchw,cd->ndhw', x, weight[:, :, a, b],
                                 precision=jax.lax.Precision.HIGHEST)
            out = out.at[:, :, a:a + (H - 1) * s + 1:s, b:b + (W - 1) * s + 1:s].add(contrib)
    mean = out.mean(axis=(0, 2, 3), keepdims=True)
    var = out.var(axis=(0, 2, 3), keepdims=True)     # biased, as in PyTorch train-mode BN
    y = (out - mean) / jnp.sqrt(var + EPS)
    y = y * gamma.reshape(1, Cout, 1, 1) + beta.reshape(1, Cout, 1, 1)
    return 0.5 * y * (1.0 + jnp.tanh(GELU_C * (y + 0.044715 * y ** 3)))


# ------------------------------------ main -------------------------------------
if __name__ == "__main__":
    # DecoderBlock(in_c=4, out_c=8, kernel_size=3, stride=2), batch=2, 8x8 input.
    N, Cin, Cout, H, W, K, S = 2, 4, 8, 8, 8, 3, 2

    key = jax.random.PRNGKey(0)
    kx, kw, kg, kb = jax.random.split(key, 4)
    x = jax.random.normal(kx, (N, Cin, H, W), dtype=jnp.float32)
    # ConvTranspose2d weight shape: (in_c, out_c, kH, kW), bias=False
    weight = jax.random.normal(kw, (Cin, Cout, K, K), dtype=jnp.float32) * 0.2
    # BatchNorm2d affine params (deterministic synthetic; PyTorch default is 1/0)
    gamma = 1.0 + 0.1 * jax.random.normal(kg, (Cout,), dtype=jnp.float32)
    beta = 0.1 * jax.random.normal(kb, (Cout,), dtype=jnp.float32)

    out = decoder_block(x, weight, gamma, beta, kernel_size=K, stride=S)
    out = jax.block_until_ready(out)

    ref = decoder_block_ref(x, weight, gamma, beta, kernel_size=K, stride=S)
    ref = jax.block_until_ready(ref)

    assert out.shape == (N, Cout, (H - 1) * S + K, (W - 1) * S + K), out.shape
    # bf16 MXU inputs (per perf review) vs. a full-f32 reference: expect ~1e-3
    # level absolute error on O(1) BN-normalized outputs, hence 2e-2 tolerance.
    max_err = float(jnp.max(jnp.abs(out - ref)))
    assert jnp.allclose(out, ref, rtol=2e-2, atol=2e-2), max_err

    print("KERNEL_OK")
</pallas_src>

<mosaic_0001>
module attributes {stable_mosaic.version = 11 : i64} {
  func.func @stats_kernel(%arg0: i32, %arg1: memref<512x36xbf16, #tpu.memory_space<vmem>>, %arg2: memref<36x128xbf16, #tpu.memory_space<vmem>>, %arg3: memref<1x8x128xf32, #tpu.memory_space<vmem>>) attributes {dimension_semantics = [#tpu.dimension_semantics<parallel>], iteration_bounds = array<i64: 2>, scalar_prefetch = 0 : i64, scratch_operands = 0 : i64, tpu.core_type = #tpu.core_type<tc>, window_params = [{transform_indices = @transform_0, window_bounds = array<i64: 512, 36>}, {pipeline_mode = #tpu.pipeline_mode<synchronous>, transform_indices = @transform_1, window_bounds = array<i64: 36, 128>}, {transform_indices = @transform_2, window_bounds = array<i64: 1, 8, 128>}]} {
    %c0 = arith.constant 0 : index
    %c0_0 = arith.constant 0 : index
    %0 = vector.load %arg1[%c0, %c0_0] : memref<512x36xbf16, #tpu.memory_space<vmem>>, vector<512x36xbf16>
    %c0_1 = arith.constant 0 : index
    %c0_2 = arith.constant 0 : index
    %1 = vector.load %arg2[%c0_1, %c0_2] : memref<36x128xbf16, #tpu.memory_space<vmem>>, vector<36x128xbf16>
    %cst = arith.constant dense<0.000000e+00> : vector<512x128xf32>
    %2 = tpu.matmul %0, %1, %cst {dimension_numbers = #tpu.dot_dimension_numbers<[1], [0], [0], [1], [0, 0, 1, 1], [], []>} : vector<512x36xbf16>, vector<36x128xbf16>, vector<512x128xf32> -> vector<512x128xf32>
    %cst_3 = arith.constant dense<0.000000e+00> : vector<128xf32>
    %3 = vector.multi_reduction <add>, %2, %cst_3 [0] : vector<512x128xf32> to vector<128xf32>
    %4 = vector.shape_cast %3 : vector<128xf32> to vector<1x128xf32>
    %5 = arith.mulf %2, %2 : vector<512x128xf32>
    %cst_4 = arith.constant dense<0.000000e+00> : vector<128xf32>
    %6 = vector.multi_reduction <add>, %5, %cst_4 [0] : vector<512x128xf32> to vector<128xf32>
    %7 = vector.shape_cast %6 : vector<128xf32> to vector<1x128xf32>
    %cst_5 = arith.constant 0.000000e+00 : f32
    %8 = vector.broadcast %cst_5 : f32 to vector<6x128xf32>
    %9 = tpu.concatenate %4, %7, %8 in 0 : vector<1x128xf32>, vector<1x128xf32>, vector<6x128xf32> -> vector<8x128xf32>
    %c0_6 = arith.constant 0 : index
    %c0_7 = arith.constant 0 : index
    %c0_8 = arith.constant 0 : index
    %10 = vector.load %arg3[%c0_6, %c0_7, %c0_8] : memref<1x8x128xf32, #tpu.memory_space<vmem>>, vector<1x8x128xf32>
    %11 = vector.shape_cast %10 : vector<1x8x128xf32> to vector<8x128xf32>
    %12 = vector.shape_cast %9 : vector<8x128xf32> to vector<1x8x128xf32>
    tpu.vector_store %arg3[%c0_6, %c0_7, %c0_8], %12 {strides = array<i32>} : memref<1x8x128xf32, #tpu.memory_space<vmem>>, vector<1x8x128xf32>,
    return
  }
  func.func @transform_0(%arg0: i32) -> (i32, i32) {
    %c0_i32 = arith.constant 0 : i32
    %c0_i32_0 = arith.constant 0 : i32
    return %arg0, %c0_i32 : i32, i32
  }
  func.func @transform_1(%arg0: i32) -> (i32, i32) {
    %c0_i32 = arith.constant 0 : i32
    %c0_i32_0 = arith.constant 0 : i32
    %c0_i32_1 = arith.constant 0 : i32
    return %c0_i32, %c0_i32_0 : i32, i32
  }
  func.func @transform_2(%arg0: i32) -> (i32, i32, i32) {
    %c0_i32 = arith.constant 0 : i32
    %c0_i32_0 = arith.constant 0 : i32
    %c0_i32_1 = arith.constant 0 : i32
    return %arg0, %c0_i32, %c0_i32_0 : i32, i32, i32
  }
}

module attributes {stable_mosaic.version = 11 : i64} {
  func.func @apply_kernel(%arg0: i32, %arg1: memref<512x36xbf16, #tpu.memory_space<vmem>>, %arg2: memref<36x128xbf16, #tpu.memory_space<vmem>>, %arg3: memref<8x128xf32, #tpu.memory_space<vmem>>, %arg4: memref<512x128xf32, #tpu.memory_space<vmem>>) attributes {dimension_semantics = [#tpu.dimension_semantics<parallel>], iteration_bounds = array<i64: 2>, scalar_prefetch = 0 : i64, scratch_operands = 0 : i64, tpu.core_type = #tpu.core_type<tc>, window_params = [{transform_indices = @transform_0, window_bounds = array<i64: 512, 36>}, {pipeline_mode = #tpu.pipeline_mode<synchronous>, transform_indices = @transform_1, window_bounds = array<i64: 36, 128>}, {pipeline_mode = #tpu.pipeline_mode<synchronous>, transform_indices = @transform_2, window_bounds = array<i64: 8, 128>}, {transform_indices = @transform_3, window_bounds = array<i64: 512, 128>}]} {
    %c0 = arith.constant 0 : index
    %c0_0 = arith.constant 0 : index
    %0 = vector.load %arg1[%c0, %c0_0] : memref<512x36xbf16, #tpu.memory_space<vmem>>, vector<512x36xbf16>
    %c0_1 = arith.constant 0 : index
    %c0_2 = arith.constant 0 : index
    %1 = vector.load %arg2[%c0_1, %c0_2] : memref<36x128xbf16, #tpu.memory_space<vmem>>, vector<36x128xbf16>
    %cst = arith.constant dense<0.000000e+00> : vector<512x128xf32>
    %2 = tpu.matmul %0, %1, %cst {dimension_numbers = #tpu.dot_dimension_numbers<[1], [0], [0], [1], [0, 0, 1, 1], [], []>} : vector<512x36xbf16>, vector<36x128xbf16>, vector<512x128xf32> -> vector<512x128xf32>
    %c0_3 = arith.constant 0 : index
    %c0_4 = arith.constant 0 : index
    %3 = vector.load %arg3[%c0_3, %c0_4] : memref<8x128xf32, #tpu.memory_space<vmem>>, vector<1x128xf32>
    %cst_5 = arith.constant 0.00173010386 : f32
    %4 = vector.broadcast %cst_5 : f32 to vector<1x128xf32>
    %5 = arith.mulf %3, %4 : vector<1x128xf32>
    %c1 = arith.constant 1 : index
    %c0_6 = arith.constant 0 : index
    %6 = vector.load %arg3[%c1, %c0_6] : memref<8x128xf32, #tpu.memory_space<vmem>>, vector<1x128xf32>
    %cst_7 = arith.constant 0.00173010386 : f32
    %7 = vector.broadcast %cst_7 : f32 to vector<1x128xf32>
    %8 = arith.mulf %6, %7 : vector<1x128xf32>
    %9 = arith.mulf %5, %5 : vector<1x128xf32>
    %10 = arith.subf %8, %9 : vector<1x128xf32>
    %cst_8 = arith.constant 0.000000e+00 : f32
    %11 = vector.broadcast %cst_8 : f32 to vector<1x128xf32>
    %12 = arith.maximumf %10, %11 : vector<1x128xf32>
    %cst_9 = arith.constant 9.99999974E-6 : f32
    %13 = vector.broadcast %cst_9 : f32 to vector<1x128xf32>
    %14 = arith.addf %12, %13 : vector<1x128xf32>
    %15 = math.rsqrt %14 : vector<1x128xf32>
    %c2 = arith.constant 2 : index
    %c0_10 = arith.constant 0 : index
    %16 = vector.load %arg3[%c2, %c0_10] : memref<8x128xf32, #tpu.memory_space<vmem>>, vector<1x128xf32>
    %17 = arith.mulf %16, %15 : vector<1x128xf32>
    %c3 = arith.constant 3 : index
    %c0_11 = arith.constant 0 : index
    %18 = vector.load %arg3[%c3, %c0_11] : memref<8x128xf32, #tpu.memory_space<vmem>>, vector<1x128xf32>
    %19 = arith.mulf %5, %17 : vector<1x128xf32>
    %20 = arith.subf %18, %19 : vector<1x128xf32>
    %21 = vector.broadcast %17 : vector<1x128xf32> to vector<512x128xf32>
    %22 = arith.mulf %2, %21 : vector<512x128xf32>
    %23 = vector.broadcast %20 : vector<1x128xf32> to vector<512x128xf32>
    %24 = arith.addf %22, %23 : vector<512x128xf32>
    %cst_12 = arith.constant 5.000000e-01 : f32
    %25 = vector.broadcast %cst_12 : f32 to vector<512x128xf32>
    %26 = arith.mulf %25, %24 : vector<512x128xf32>
    %cst_13 = arith.constant 4.471500e-02 : f32
    %27 = vector.broadcast %cst_13 : f32 to vector<512x128xf32>
    %28 = arith.mulf %27, %24 : vector<512x128xf32>
    %29 = arith.mulf %28, %24 : vector<512x128xf32>
    %30 = arith.mulf %29, %24 : vector<512x128xf32>
    %31 = arith.addf %24, %30 : vector<512x128xf32>
    %cst_14 = arith.constant 0.797884583 : f32
    %32 = vector.broadcast %cst_14 : f32 to vector<512x128xf32>
    %33 = arith.mulf %32, %31 : vector<512x128xf32>
    %34 = math.tanh %33 : vector<512x128xf32>
    %cst_15 = arith.constant 1.000000e+00 : f32
    %35 = vector.broadcast %cst_15 : f32 to vector<512x128xf32>
    %36 = arith.addf %35, %34 : vector<512x128xf32>
    %37 = arith.mulf %26, %36 : vector<512x128xf32>
    %c0_16 = arith.constant 0 : index
    %c0_17 = arith.constant 0 : index
    %38 = vector.load %arg4[%c0_16, %c0_17] : memref<512x128xf32, #tpu.memory_space<vmem>>, vector<512x128xf32>
    tpu.vector_store %arg4[%c0_16, %c0_17], %37 {strides = array<i32>} : memref<512x128xf32, #tpu.memory_space<vmem>>, vector<512x128xf32>,
    return
  }
  func.func @transform_0(%arg0: i32) -> (i32, i32) {
    %c0_i32 = arith.constant 0 : i32
    %c0_i32_0 = arith.constant 0 : i32
    return %arg0, %c0_i32 : i32, i32
  }
  func.func @transform_1(%arg0: i32) -> (i32, i32) {
    %c0_i32 = arith.constant 0 : i32
    %c0_i32_0 = arith.constant 0 : i32
    %c0_i32_1 = arith.constant 0 : i32
    return %c0_i32, %c0_i32_0 : i32, i32
  }
  func.func @transform_2(%arg0: i32) -> (i32, i32) {
    %c0_i32 = arith.constant 0 : i32
    %c0_i32_0 = arith.constant 0 : i32
    %c0_i32_1 = arith.constant 0 : i32
    return %c0_i32, %c0_i32_0 : i32, i32
  }
  func.func @transform_3(%arg0: i32) -> (i32, i32) {
    %c0_i32 = arith.constant 0 : i32
    %c0_i32_0 = arith.constant 0 : i32
    return %arg0, %c0_i32 : i32, i32
  }
}

</mosaic_0001>

<bundles_post_ra>
// kernel: decoder_block.2
= control target key start
LH: loop header
LB: loop body
LE: loop exit
PB: predicated region body
PF: predicated region fallthrough
CT: control target
= control target key end

     0   :  { %s1294_s9 = smov 0   ;;  %s1555_s0 = inlined_call_operand.vmem [shape: bf16[1024,36], index: 0, kind: input, shape index: {}]   ;;  %s1556_s1 = inlined_call_operand.vmem [shape: bf16[36,128], index: 1, kind: input, shape index: {}]   ;;  %s1557_s2 = inlined_call_operand.vmem [shape: f32[2,8,128], index: 2, kind: output, shape index: {}]  }
   0x1 LB: > { %s1300_s10 = sadd.s32 4294967295, %s1277_s9   ;;  %p1042_p0 = scmp.ge.s32.totalorder %s1277_s9, 1  ;;  %s1277_s9 = sphi %s1294_s9, %s12_s9  }
   0x2   : > { %p113_p1 = scmp.lt.s32.totalorder %s1277_s9, 3 }
   0x4   : > { %p114_p2 = pnand %p1042_p0, %p113_p1 }
   0x5   : > { %v1236_v0 = vld [vmem:[%s1556_s1] sm:$0xff] (!%p114_p2)   ;;  %v1237_v1 = vld [vmem:[%s1556_s1 + $0x8] sm:$0xff] (!%p114_p2)   ;;  %s1043_s15 = sshll.u32 (!%p114_p2), %s1300_s10, 6  ;;  %v1238_v2 = vld [vmem:[%s1556_s1 + $0x10] ss:$0 sps:$4 sm:$0x33] (!%p114_p2)  }
   0x6   : > { %117 = sbr.rel (%p114_p2) target bundleno = 376 (0x178), region = 28  ;;  %1150 = vmatprep.subr.bf16.mxu0 (!%p114_p2), %v1236_v0  ;;  %p135_p3 = scmp.lt.s32.totalorder (!%p114_p2), %s1043_s15, 127  ;;  %1220 = vmatprep.subr.bf16.mxu1 (!%p114_p2), %v1236_v0  ;;  %vm486_vm0 = vcmask (!%p114_p2), 1041408   ;;  %vm389_vm1 = vcmask (!%p114_p2), 293888   ;;  %vm981_vm2 = vcmask (!%p114_p2), 1040384  }
   0x7   : > { %1151 = vmatpush3.bf16.msra.mxu0 (!%p114_p2), %v1236_v0  ;;  %1223 = vmatpush3.bf16.msra.mxu1 (!%p114_p2), %v1236_v0  ;;  %v488_v3 = vsel (!%p114_p2), %vm486_vm0, %v1238_v2, 0  ;;  %p140_p4 = scmp.lt.s32.totalorder (!%p114_p2), %s1300_s10, 1 }
   0x8   : > { %1152 = vmatprep.subr.bf16.mxu0 (!%p114_p2), %v1237_v1  ;;  %1221 = vmatprep.subr.bf16.mxu1 (!%p114_p2), %v1237_v1 }
   0xb   : > { %1153 = vmatpush3.bf16.msra.mxu0 (!%p114_p2), %v1237_v1  ;;  %1224 = vmatpush3.bf16.msra.mxu1 (!%p114_p2), %v1237_v1 }
   0xc   : > { %1226 = vmatprep.subr.msk.bf16.mxu0 (!%p114_p2), %vm486_vm0, %v1238_v2  ;;  %1227 = vmatprep.subr.msk.bf16.mxu1 (!%p114_p2), %vm486_vm0, %v1238_v2 }
   0xd   : > { %s1559_s15 = smov (!%p135_p3, %s1043_s15), 127  ;;  %s1561_s10 = smov (!%p140_p4, %s1300_s10), 1 }
   0xe   : > { %s1044_s18 = sshll.u32 %s1559_s15, 2  ;;  %s1045_s22 = sshll.u32 %s1561_s10, 3 }
   0xf   : > { %s1317_s21 = scalar_lea.vmem %s1555_s0, %s1044_s18  ;;  %1155 = vmatpush3.bf16.msra.mxu0 %v488_v3  ;;  %1225 = vmatpush3.bf16.msra.mxu1 %v488_v3  ;;  %s143_s25 = scalar_lea.vmem %s1557_s2, %s1045_s22 }
  0x10   : > { %v1239_v4 = vld [vmem:[%s1317_s21] sm:$0xff]   ;;  %v1240_v5 = vld [vmem:[%s1317_s21 + $0x8] sm:$0xff]   ;;  %v1241_v6 = vld [vmem:[%s1317_s21 + $0x10] sm:$0xff]  }
  0x11   : > { %1156 = vmatprep.mubr.msk.bf16.mxu0 %vm389_vm1, %v1239_v4  ;;  %v1242_v7 = vld [vmem:[%s1317_s21 + $0x18] sm:$0xff]   ;;  %v1243_v8 = vld [vmem:[%s1317_s21 + $0x20] sm:$0xff]   ;;  %v1244_v9 = vld [vmem:[%s1317_s21 + $0x28] sm:$0xff]  }
  0x12   : > { %1157 = vmatmul.mubr.msk.bf16.vlgmr.msra.gmra.mrb[0].mxu0 %vm389_vm1, %v1240_v5  ;;  %v1255_v10 = vld [vmem:[%s1317_s21 + $0x80] sm:$0xff]   ;;  %v1256_v11 = vld [vmem:[%s1317_s21 + $0x88] sm:$0xff]   ;;  %v1257_v12 = vld [vmem:[%s1317_s21 + $0x90] sm:$0xff]  }
  0x13   : > { %1160 = vmatprep.mubr.msk.bf16.mxu0 %vm389_vm1, %v1241_v6  ;;  %1188 = vmatprep.mubr.msk.bf16.mxu1 %vm389_vm1, %v1255_v10  ;;  %v1245_v13 = vld [vmem:[%s1317_s21 + $0x30] sm:$0xff]   ;;  %v1258_v14 = vld [vmem:[%s1317_s21 + $0x98] sm:$0xff]   ;;  %v1259_v15 = vld [vmem:[%s1317_s21 + $0xa0] sm:$0xff]  }
  0x14   : > { %1189 = vmatmul.mubr.msk.bf16.vlgmr.msra.gmra.mrb[0].mxu1 %vm389_vm1, %v1256_v11  ;;  %v1246_v16 = vld [vmem:[%s1317_s21 + $0x38] sm:$0xff]   ;;  %v1247_v17 = vld [vmem:[%s1317_s21 + $0x40] sm:$0xff]   ;;  %v1260_v18 = vld [vmem:[%s1317_s21 + $0xa8] sm:$0xff]  }
  0x15   : > { %1192 = vmatprep.mubr.msk.bf16.mxu1 %vm389_vm1, %v1257_v12  ;;  %v1261_v19 = vld [vmem:[%s1317_s21 + $0xb0] sm:$0xff]   ;;  %v1248_v20 = vld [vmem:[%s1317_s21 + $0x48] sm:$0xff]   ;;  %v1262_v22 = vld [vmem:[%s1317_s21 + $0xb8] sm:$0xff]  }
  0x16   : > { %v1249_v21 = vld [vmem:[%s1317_s21 + $0x50] sm:$0xff]   ;;  %v1263_v23 = vld [vmem:[%s1317_s21 + $0xc0] sm:$0xff]   ;;  %v1250_v24 = vld [vmem:[%s1317_s21 + $0x58] sm:$0xff]  }
  0x17   : > { %v1251_v25 = vld [vmem:[%s1317_s21 + $0x60] sm:$0xff]   ;;  %v1264_v26 = vld [vmem:[%s1317_s21 + $0xc8] sm:$0xff]   ;;  %v1265_v27 = vld [vmem:[%s1317_s21 + $0xd0] sm:$0xff]  }
  0x18   : > { %v1252_v28 = vld [vmem:[%s1317_s21 + $0x68] sm:$0xff]   ;;  %v1253_v29 = vld [vmem:[%s1317_s21 + $0x70] sm:$0xff]   ;;  %v1266_v30 = vld [vmem:[%s1317_s21 + $0xd8] sm:$0xff]  }
  0x19   : > { %v1267_v31 = vld [vmem:[%s1317_s21 + $0xe0] sm:$0xff]   ;;  %v1254_v32 = vld [vmem:[%s1317_s21 + $0x78] sm:$0xff]   ;;  %v1268_v33 = vld [vmem:[%s1317_s21 + $0xe8] sm:$0xff]  }
  0x1a   : > { %1161 = vmatmul.mubr.msk.bf16.gmra.mrb[4].mxu0 %vm389_vm1, %v1242_v7  ;;  %v1269_v34 = vld [vmem:[%s1317_s21 + $0xf0] sm:$0xff]   ;;  %v1270_v35 = vld [vmem:[%s1317_s21 + $0xf8] sm:$0xff]  }
  0x1b   : > { %1164 = vmatprep.mubr.msk.bf16.mxu0 %vm389_vm1, %v1243_v8 }
  0x1c   : > { %1193 = vmatmul.mubr.msk.bf16.gmra.mrb[4].mxu1 %vm389_vm1, %v1258_v14 }
  0x1d   : > { %1196 = vmatprep.mubr.msk.bf16.mxu1 %vm389_vm1, %v1259_v15 }
  0x22   : > { %1165 = vmatmul.mubr.msk.bf16.gmra.mrb[8].mxu0 %vm389_vm1, %v1244_v9 }
  0x23   : > { %1168 = vmatprep.mubr.msk.bf16.mxu0 %vm389_vm1, %v1245_v13 }
  0x24   : > { %1197 = vmatmul.mubr.msk.bf16.gmra.mrb[8].mxu1 %vm389_vm1, %v1260_v18 }
  0x25   : > { %1200 = vmatprep.mubr.msk.bf16.mxu1 %vm389_vm1, %v1261_v19 }
  0x2a   : > { %1169 = vmatmul.mubr.msk.bf16.gmra.mrb[12].mxu0 %vm389_vm1, %v1246_v16 }
  0x2b   : > { %1172 = vmatprep.mubr.msk.bf16.mxu0 %vm389_vm1, %v1247_v17 }
  0x2c   : > { %1201 = vmatmul.mubr.msk.bf16.gmra.mrb[12].mxu1 %vm389_vm1, %v1262_v22 }
  0x2d   : > { %1204 = vmatprep.mubr.msk.bf16.mxu1 %vm389_vm1, %v1263_v23 }
  0x32   : > { %1173 = vmatmul.mubr.msk.bf16.gmra.mrb[16].mxu0 %vm389_vm1, %v1248_v20 }
  0x33   : > { %1176 = vmatprep.mubr.msk.bf16.mxu0 %vm389_vm1, %v1249_v21 }
  0x34   : > { %1205 = vmatmul.mubr.msk.bf16.gmra.mrb[16].mxu1 %vm389_vm1, %v1264_v26 }
  0x35   : > { %1208 = vmatprep.mubr.msk.bf16.mxu1 %vm389_vm1, %v1265_v27 }
  0x3a   : > { %1177 = vmatmul.mubr.msk.bf16.gmra.mrb[20].mxu0 %vm389_vm1, %v1250_v24 }
  0x3b   : > { %1180 = vmatprep.mubr.msk.bf16.mxu0 %vm389_vm1, %v1251_v25 }
  0x3c   : > { %1209 = vmatmul.mubr.msk.bf16.gmra.mrb[20].mxu1 %vm389_vm1, %v1266_v30 }
  0x3d   : > { %1212 = vmatprep.mubr.msk.bf16.mxu1 %vm389_vm1, %v1267_v31 }
  0x42   : > { %1181 = vmatmul.mubr.msk.bf16.gmra.mrb[24].mxu0 %vm389_vm1, %v1252_v28 }
  0x43   : > { %1184 = vmatprep.mubr.msk.bf16.mxu0 %vm389_vm1, %v1253_v29 }
  0x44   : > { %1213 = vmatmul.mubr.msk.bf16.gmra.mrb[24].mxu1 %vm389_vm1, %v1268_v33 }
  0x45   : > { %1216 = vmatprep.mubr.msk.bf16.mxu1 %vm389_vm1, %v1269_v34 }
  0x4a   : > { %1185 = vmatmul.mubr.msk.bf16.gmra.mrb[28].mxu0 %vm389_vm1, %v1254_v32 }
  0x4c   : > { %1217 = vmatmul.mubr.msk.bf16.gmra.mrb[28].mxu1 %vm389_vm1, %v1270_v35 }
  0xe5   : > { %v1158_v36 = vpop.f32.mrb[0].mxu0 }
  0xe6   : > { %v524_v37 = vpop.f32.mrb[1].mxu0  ;;  %v850_v43 = vmul.f32 %v1158_v36, %v1158_v36 }
  0xe7   : > { %v1159_v38 = vpop.f32.mrb[2].mxu0  ;;  %v848_v40 = vmul.f32 %v524_v37, %v524_v37  ;;  %v1386_v59 = vpop.f32.mrb[0].mxu1 }
  0xe8   : > { %v527_v39 = vpop.f32.mrb[3].mxu0  ;;  %v851_v46 = vmul.f32 %v1159_v38, %v1159_v38  ;;  %v1388_v63 = vpop.f32.mrb[1].mxu1 }
  0xe9   : > { %v779_v41 = vadd.f32 %v527_v39, %v524_v37  ;;  %v849_v42 = vmul.f32 %v527_v39, %v527_v39  ;;  %v1390_v0 = vpop.f32.mrb[2].mxu1 }
  0xea   : > { %v1392_v5 = vpop.f32.mrb[3].mxu1 }
  0xeb   : > { %v780_v44 = vadd.f32 %v1158_v36, %v779_v41  ;;  %v912_v45 = vadd.f32 %v849_v42, %v848_v40 }
  0xed   : > { %v913_v47 = vadd.f32 %v912_v45, %v850_v43  ;;  %v1162_v48 = vpop.f32.mrb[4].mxu0  ;;  %v781_v49 = vadd.f32 %v1159_v38, %v780_v44 }
  0xee   : > { %v540_v50 = vpop.f32.mrb[5].mxu0  ;;  %v854_v60 = vmul.f32 %v1162_v48, %v1162_v48 }
  0xef   : > { %v782_v51 = vadd.f32 %v781_v49, %v540_v50  ;;  %v852_v52 = vmul.f32 %v540_v50, %v540_v50  ;;  %v914_v53 = vadd.f32 %v913_v47, %v851_v46  ;;  %v1163_v54 = vpop.f32.mrb[6].mxu0  ;;  %v1394_v15 = vpop.f32.mrb[4].mxu1 }
  0xf0   : > { %v543_v55 = vpop.f32.mrb[7].mxu0  ;;  %v855_v1 = vmul.f32 %v1163_v54, %v1163_v54  ;;  %v1396_v19 = vpop.f32.mrb[5].mxu1 }
  0xf1   : > { %v915_v56 = vadd.f32 %v914_v53, %v852_v52  ;;  %v783_v57 = vadd.f32 %v782_v51, %v543_v55  ;;  %v853_v58 = vmul.f32 %v543_v55, %v543_v55  ;;  %v1398_v20 = vpop.f32.mrb[6].mxu1 }
  0xf2   : > { %v1400_v25 = vpop.f32.mrb[7].mxu1 }
  0xf3   : > { %v784_v61 = vadd.f32 %v1162_v48, %v783_v57  ;;  %v916_v62 = vadd.f32 %v915_v56, %v853_v58 }
  0xf5   : > { %v917_v2 = vadd.f32 %v916_v62, %v854_v60  ;;  %v1166_v3 = vpop.f32.mrb[8].mxu0  ;;  %v785_v4 = vadd.f32 %v1163_v54, %v784_v61 }
  0xf6   : > { %v556_v6 = vpop.f32.mrb[9].mxu0  ;;  %v858_v16 = vmul.f32 %v1166_v3, %v1166_v3 }
  0xf7   : > { %v786_v7 = vadd.f32 %v785_v4, %v556_v6  ;;  %v856_v8 = vmul.f32 %v556_v6, %v556_v6  ;;  %v918_v9 = vadd.f32 %v917_v2, %v855_v1  ;;  %v1167_v10 = vpop.f32.mrb[10].mxu0  ;;  %v1402_v35 = vpop.f32.mrb[8].mxu1 }
  0xf8   : > { %v559_v11 = vpop.f32.mrb[11].mxu0  ;;  %v859_v21 = vmul.f32 %v1167_v10, %v1167_v10  ;;  %v1404_v39 = vpop.f32.mrb[9].mxu1 }
  0xf9   : > { %v919_v12 = vadd.f32 %v918_v9, %v856_v8  ;;  %v787_v13 = vadd.f32 %v786_v7, %v559_v11  ;;  %v857_v14 = vmul.f32 %v559_v11, %v559_v11  ;;  %v1406_v40 = vpop.f32.mrb[10].mxu1 }
  0xfa   : > { %v1408_v45 = vpop.f32.mrb[11].mxu1 }
  0xfb   : > { %v788_v17 = vadd.f32 %v1166_v3, %v787_v13  ;;  %v920_v18 = vadd.f32 %v919_v12, %v857_v14 }
  0xfd   : > { %v921_v22 = vadd.f32 %v920_v18, %v858_v16  ;;  %v1170_v23 = vpop.f32.mrb[12].mxu0  ;;  %v789_v24 = vadd.f32 %v1167_v10, %v788_v17 }
  0xfe   : > { %v572_v26 = vpop.f32.mrb[13].mxu0  ;;  %v862_v36 = vmul.f32 %v1170_v23, %v1170_v23 }
  0xff   : > { %v790_v27 = vadd.f32 %v789_v24, %v572_v26  ;;  %v860_v28 = vmul.f32 %v572_v26, %v572_v26  ;;  %v922_v29 = vadd.f32 %v921_v22, %v859_v21  ;;  %v1171_v30 = vpop.f32.mrb[14].mxu0  ;;  %v1410_v55 = vpop.f32.mrb[12].mxu1 }
 0x100   : > { %v575_v31 = vpop.f32.mrb[15].mxu0  ;;  %v863_v41 = vmul.f32 %v1171_v30, %v1171_v30  ;;  %v1412_v60 = vpop.f32.mrb[13].mxu1 }
 0x101   : > { %v923_v32 = vadd.f32 %v922_v29, %v860_v28  ;;  %v791_v33 = vadd.f32 %v790_v27, %v575_v31  ;;  %v861_v34 = vmul.f32 %v575_v31, %v575_v31  ;;  %v1414_v61 = vpop.f32.mrb[14].mxu1 }
 0x102   : > { %v1416_v4 = vpop.f32.mrb[15].mxu1 }
 0x103   : > { %v792_v37 = vadd.f32 %v1170_v23, %v791_v33  ;;  %v924_v38 = vadd.f32 %v923_v32, %v861_v34 }
 0x105   : > { %v925_v42 = vadd.f32 %v924_v38, %v862_v36  ;;  %v1174_v43 = vpop.f32.mrb[16].mxu0  ;;  %v793_v44 = vadd.f32 %v1171_v30, %v792_v37 }
 0x106   : > { %v588_v46 = vpop.f32.mrb[17].mxu0  ;;  %v866_v56 = vmul.f32 %v1174_v43, %v1174_v43 }
 0x107   : > { %v794_v47 = vadd.f32 %v793_v44, %v588_v46  ;;  %v864_v48 = vmul.f32 %v588_v46, %v588_v46  ;;  %v926_v49 = vadd.f32 %v925_v42, %v863_v41  ;;  %v1175_v50 = vpop.f32.mrb[18].mxu0  ;;  %v1418_v16 = vpop.f32.mrb[16].mxu1 }
 0x108   : > { %v591_v51 = vpop.f32.mrb[19].mxu0  ;;  %v867_v62 = vmul.f32 %v1175_v50, %v1175_v50  ;;  %v1420_v22 = vpop.f32.mrb[17].mxu1 }
 0x109   : > { %v927_v52 = vadd.f32 %v926_v49, %v864_v48  ;;  %v795_v53 = vadd.f32 %v794_v47, %v591_v51  ;;  %v865_v54 = vmul.f32 %v591_v51, %v591_v51  ;;  %v1422_v23 = vpop.f32.mrb[18].mxu1 }
 0x10a   : > { %v1424_v29 = vpop.f32.mrb[19].mxu1 }
 0x10b   : > { %v796_v57 = vadd.f32 %v1174_v43, %v795_v53  ;;  %v928_v58 = vadd.f32 %v927_v52, %v865_v54 }
 0x10d   : > { %v929_v1 = vadd.f32 %v928_v58, %v866_v56  ;;  %v1178_v2 = vpop.f32.mrb[20].mxu0  ;;  %v797_v3 = vadd.f32 %v1175_v50, %v796_v57 }
 0x10e   : > { %v604_v6 = vpop.f32.mrb[21].mxu0  ;;  %v870_v17 = vmul.f32 %v1178_v2, %v1178_v2 }
 0x10f   : > { %v798_v7 = vadd.f32 %v797_v3, %v604_v6  ;;  %v868_v8 = vmul.f32 %v604_v6, %v604_v6  ;;  %v930_v9 = vadd.f32 %v929_v1, %v867_v62  ;;  %v1179_v10 = vpop.f32.mrb[22].mxu0  ;;  %v1426_v42 = vpop.f32.mrb[20].mxu1 }
 0x110   : > { %v607_v11 = vpop.f32.mrb[23].mxu0  ;;  %v871_v24 = vmul.f32 %v1179_v10, %v1179_v10  ;;  %v1428_v47 = vpop.f32.mrb[21].mxu1 }
 0x111   : > { %v931_v12 = vadd.f32 %v930_v9, %v868_v8  ;;  %v799_v13 = vadd.f32 %v798_v7, %v607_v11  ;;  %v869_v14 = vmul.f32 %v607_v11, %v607_v11  ;;  %v1430_v48 = vpop.f32.mrb[22].mxu1 }
 0x112   : > { %v1432_v53 = vpop.f32.mrb[23].mxu1 }
 0x113   : > { %v800_v18 = vadd.f32 %v1178_v2, %v799_v13  ;;  %v932_v21 = vadd.f32 %v931_v12, %v869_v14 }
 0x115   : > { %v933_v26 = vadd.f32 %v932_v21, %v870_v17  ;;  %v1182_v27 = vpop.f32.mrb[24].mxu0  ;;  %v801_v28 = vadd.f32 %v1179_v10, %v800_v18  ;;  %v880_v18 = vmul.f32 %v1388_v63, %v1388_v63 }
 0x116   : > { %v620_v30 = vpop.f32.mrb[25].mxu0  ;;  %v874_v43 = vmul.f32 %v1182_v27, %v1182_v27 }
 0x117   : > { %v802_v31 = vadd.f32 %v801_v28, %v620_v30  ;;  %v872_v32 = vmul.f32 %v620_v30, %v620_v30  ;;  %v934_v33 = vadd.f32 %v933_v26, %v871_v24  ;;  %v1183_v34 = vpop.f32.mrb[26].mxu0  ;;  %v1434_v7 = vpop.f32.mrb[24].mxu1  ;;  %v881_v30 = vmul.f32 %v1392_v5, %v1392_v5 }
 0x118   : > { %v623_v36 = vpop.f32.mrb[27].mxu0  ;;  %v875_v49 = vmul.f32 %v1183_v34, %v1183_v34  ;;  %v1436_v11 = vpop.f32.mrb[25].mxu1 }
 0x119   : > { %v935_v37 = vadd.f32 %v934_v33, %v872_v32  ;;  %v803_v38 = vadd.f32 %v802_v31, %v623_v36  ;;  %v873_v41 = vmul.f32 %v623_v36, %v623_v36  ;;  %v1438_v12 = vpop.f32.mrb[26].mxu1  ;;  %v882_v32 = vmul.f32 %v1386_v59, %v1386_v59 }
 0x11a   : > { %v1442_v21 = vpop.f32.mrb[27].mxu1 }
 0x11b   : > { %v804_v44 = vadd.f32 %v1182_v27, %v803_v38  ;;  %v936_v46 = vadd.f32 %v935_v37, %v873_v41 }
 0x11d   : > { %v937_v50 = vadd.f32 %v936_v46, %v874_v43  ;;  %v1186_v51 = vpop.f32.mrb[28].mxu0  ;;  %v805_v52 = vadd.f32 %v1183_v34, %v804_v44 }
 0x11e   : > { %v636_v54 = vpop.f32.mrb[29].mxu0  ;;  %v878_v8 = vmul.f32 %v1186_v51, %v1186_v51 }
 0x11f   : > { %v806_v56 = vadd.f32 %v805_v52, %v636_v54  ;;  %v876_v57 = vmul.f32 %v636_v54, %v636_v54  ;;  %v938_v58 = vadd.f32 %v937_v50, %v875_v49  ;;  %v1187_v62 = vpop.f32.mrb[30].mxu0  ;;  %v1448_v31 = vpop.f32.mrb[28].mxu1  ;;  %v885_v50 = vmul.f32 %v1400_v25, %v1400_v25 }
 0x120   : > { %v639_v1 = vpop.f32.mrb[31].mxu0  ;;  %v879_v13 = vmul.f32 %v1187_v62, %v1187_v62  ;;  %v1453_v36 = vpop.f32.mrb[29].mxu1  ;;  %v887_v54 = vmul.f32 %v1398_v20, %v1398_v20 }
 0x121   : > { %v939_v2 = vadd.f32 %v938_v58, %v876_v57  ;;  %v807_v3 = vadd.f32 %v806_v56, %v639_v1  ;;  %v877_v6 = vmul.f32 %v639_v1, %v639_v1  ;;  %v1455_v37 = vpop.f32.mrb[30].mxu1 }
 0x122   : > { %v1462_v43 = vpop.f32.mrb[31].mxu1 }
 0x123   : > { %v808_v9 = vadd.f32 %v1186_v51, %v807_v3  ;;  %v940_v10 = vadd.f32 %v939_v2, %v877_v6  ;;  %v886_v51 = vmul.f32 %v1394_v15, %v1394_v15  ;;  %v889_v2 = vmul.f32 %v1408_v45, %v1408_v45 }
 0x125   : > { %v941_v14 = vadd.f32 %v940_v10, %v878_v8  ;;  %v809_v17 = vadd.f32 %v1187_v62, %v808_v9 }
 0x127   : > { %v810_v24 = vadd.f32 %v809_v17, %v1388_v63  ;;  %v942_v26 = vadd.f32 %v941_v14, %v879_v13  ;;  %v883_v63 = vmul.f32 %v1390_v0, %v1390_v0  ;;  %v893_v17 = vmul.f32 %v1416_v4, %v1416_v4 }
 0x129   : > { %v943_v27 = vadd.f32 %v942_v26, %v880_v18  ;;  %v811_v28 = vadd.f32 %v810_v24, %v1392_v5  ;;  %v884_v5 = vmul.f32 %v1396_v19, %v1396_v19 }
 0x12b   : > { %v812_v33 = vadd.f32 %v1386_v59, %v811_v28  ;;  %v944_v34 = vadd.f32 %v943_v27, %v881_v30 }
 0x12d   : > { %v945_v38 = vadd.f32 %v944_v34, %v882_v32  ;;  %v813_v41 = vadd.f32 %v1390_v0, %v812_v33  ;;  %v897_v33 = vmul.f32 %v1424_v29, %v1424_v29 }
 0x12f   : > { %v814_v44 = vadd.f32 %v813_v41, %v1396_v19  ;;  %v946_v46 = vadd.f32 %v945_v38, %v883_v63  ;;  %v888_v19 = vmul.f32 %v1404_v39, %v1404_v39 }
 0x131   : > { %v947_v59 = vadd.f32 %v946_v46, %v884_v5  ;;  %v815_v49 = vadd.f32 %v814_v44, %v1400_v25 }
 0x133   : > { %v816_v52 = vadd.f32 %v1394_v15, %v815_v49  ;;  %v948_v0 = vadd.f32 %v947_v59, %v885_v50  ;;  %v890_v15 = vmul.f32 %v1402_v35, %v1402_v35  ;;  %v901_v59 = vmul.f32 %v1432_v53, %v1432_v53 }
 0x135   : > { %v949_v56 = vadd.f32 %v948_v0, %v886_v51  ;;  %v817_v57 = vadd.f32 %v1398_v20, %v816_v52  ;;  %v891_v20 = vmul.f32 %v1406_v40, %v1406_v40 }
 0x137   : > { %v818_v58 = vadd.f32 %v817_v57, %v1404_v39  ;;  %v950_v62 = vadd.f32 %v949_v56, %v887_v54  ;;  %v892_v39 = vmul.f32 %v1412_v60, %v1412_v60  ;;  %v905_v57 = vmul.f32 %v1442_v21, %v1442_v21 }
 0x139   : > { %v951_v1 = vadd.f32 %v950_v62, %v888_v19  ;;  %v819_v25 = vadd.f32 %v818_v58, %v1408_v45 }
 0x13b   : > { %v820_v3 = vadd.f32 %v1402_v35, %v819_v25  ;;  %v952_v6 = vadd.f32 %v951_v1, %v889_v2  ;;  %v894_v35 = vmul.f32 %v1410_v55, %v1410_v55  ;;  %v908_v1 = vmul.f32 %v1453_v36, %v1453_v36 }
 0x13d   : > { %v953_v8 = vadd.f32 %v952_v6, %v890_v15  ;;  %v821_v9 = vadd.f32 %v1406_v40, %v820_v3  ;;  %v895_v40 = vmul.f32 %v1414_v61, %v1414_v61  ;;  %v910_v3 = vmul.f32 %v1448_v31, %v1448_v31 }
 0x13f   : > { %v822_v10 = vadd.f32 %v821_v9, %v1412_v60  ;;  %v954_v13 = vadd.f32 %v953_v8, %v891_v20  ;;  %v896_v60 = vmul.f32 %v1420_v22, %v1420_v22 }
 0x141   : > { %v955_v14 = vadd.f32 %v954_v13, %v892_v39  ;;  %v823_v45 = vadd.f32 %v822_v10, %v1416_v4 }
 0x143   : > { %v824_v18 = vadd.f32 %v1410_v55, %v823_v45  ;;  %v956_v24 = vadd.f32 %v955_v14, %v893_v17  ;;  %v898_v55 = vmul.f32 %v1418_v16, %v1418_v16 }
 0x145   : > { %v957_v26 = vadd.f32 %v956_v24, %v894_v35  ;;  %v825_v27 = vadd.f32 %v1414_v61, %v824_v18  ;;  %v899_v61 = vmul.f32 %v1422_v23, %v1422_v23 }
 0x147   : > { %v826_v28 = vadd.f32 %v825_v27, %v1420_v22  ;;  %v958_v30 = vadd.f32 %v957_v26, %v895_v40  ;;  %v900_v22 = vmul.f32 %v1428_v47, %v1428_v47 }
 0x149   : > { %v959_v32 = vadd.f32 %v958_v30, %v896_v60  ;;  %v827_v4 = vadd.f32 %v826_v28, %v1424_v29 }
 0x14b   : > { %v828_v34 = vadd.f32 %v1418_v16, %v827_v4  ;;  %v960_v63 = vadd.f32 %v959_v32, %v897_v33  ;;  %v902_v16 = vmul.f32 %v1426_v42, %v1426_v42 }
 0x14d   : > { %v961_v38 = vadd.f32 %v960_v63, %v898_v55  ;;  %v829_v41 = vadd.f32 %v1422_v23, %v828_v34  ;;  %v903_v23 = vmul.f32 %v1430_v48, %v1430_v48 }
 0x14f   : > { %v830_v5 = vadd.f32 %v829_v41, %v1428_v47  ;;  %v962_v44 = vadd.f32 %v961_v38, %v899_v61  ;;  %v904_v47 = vmul.f32 %v1436_v11, %v1436_v11 }
 0x151   : > { %v963_v46 = vadd.f32 %v962_v44, %v900_v22  ;;  %v831_v29 = vadd.f32 %v830_v5, %v1432_v53 }
 0x153   : > { %v832_v49 = vadd.f32 %v1426_v42, %v831_v29  ;;  %v964_v50 = vadd.f32 %v963_v46, %v901_v59  ;;  %v906_v42 = vmul.f32 %v1434_v7, %v1434_v7 }
 0x155   : > { %v965_v51 = vadd.f32 %v964_v50, %v902_v16  ;;  %v833_v52 = vadd.f32 %v1430_v48, %v832_v49  ;;  %v907_v48 = vmul.f32 %v1438_v12, %v1438_v12 }
 0x157   : > { %v834_v0 = vadd.f32 %v833_v52, %v1436_v11  ;;  %v966_v54 = vadd.f32 %v965_v51, %v903_v23 }
 0x159   : > { %v967_v56 = vadd.f32 %v966_v54, %v904_v47  ;;  %v835_v53 = vadd.f32 %v834_v0, %v1442_v21 }
 0x15b   : > { %v836_v19 = vadd.f32 %v1434_v7, %v835_v53  ;;  %v968_v58 = vadd.f32 %v967_v56, %v905_v57  ;;  %v909_v7 = vmul.f32 %v1462_v43, %v1462_v43 }
 0x15d   : > { %v969_v62 = vadd.f32 %v968_v58, %v906_v42  ;;  %v837_v11 = vadd.f32 %v1438_v12, %v836_v19  ;;  %v911_v12 = vmul.f32 %v1455_v37, %v1455_v37 }
 0x15f   : > { %v838_v25 = vadd.f32 %v837_v11, %v1453_v36  ;;  %v970_v2 = vadd.f32 %v969_v62, %v907_v48 }
 0x161   : > { %v971_v21 = vadd.f32 %v970_v2, %v908_v1  ;;  %v839_v15 = vadd.f32 %v838_v25, %v1462_v43 }
 0x163   : > { %v840_v6 = vadd.f32 %v1448_v31, %v839_v15  ;;  %v972_v20 = vadd.f32 %v971_v21, %v909_v7 }
 0x165   : > { %v841_v8 = vadd.f32 %v1455_v37, %v840_v6  ;;  %v973_v36 = vadd.f32 %v972_v20, %v910_v3 }
 0x167   : > { %v842_v9 = vrot.slane %v841_v8, 4  ;;  %v974_v39 = vadd.f32 %v973_v36, %v911_v12 }
 0x169   : > { %v843_v10 = vadd.f32 %v842_v9, %v841_v8  ;;  %v975_v13 = vrot.slane %v974_v39, 4 }
 0x16b   : > { %v844_v14 = vrot.slane %v843_v10, 2  ;;  %v976_v45 = vadd.f32 %v975_v13, %v974_v39 }
 0x16d   : > { %v845_v43 = vadd.f32 %v844_v14, %v843_v10  ;;  %v977_v17 = vrot.slane %v976_v45, 2 }
 0x16f   : > { %v846_v35 = vrot.slane %v845_v43, 1  ;;  %v978_v18 = vadd.f32 %v977_v17, %v976_v45 }
 0x171   : > { %v979_v31 = vrot.slane %v978_v18, 1  ;;  %v847_v24 = vadd.f32 %v846_v35, %v845_v43 }
 0x173   : > { %v980_v40 = vadd.f32 %v979_v31, %v978_v18 }
 0x175   : > { %v982_v37 = vsel %vm981_vm2, %v847_v24, %v980_v40 }
 0x176   : > { %v983_v26 = vsel %vm486_vm0, %v982_v37, 0.0 }
 0x177   : > { %984 = vst [vmem:[%s143_s25] sm:$0xff] %v983_v26 }
 0x178 PF: > { %s12_s9 = sadd.s32 1, %s1277_s9  }
 0x179   : > { %p9_p5 = scmp.ge.s32.totalorder %s12_s9, 4  }
 0x17b   :  { %11 = sbr.rel (!%p9_p5) target bundleno = 1 (0x1), region = 58 }

// kernel: decoder_block.3
= control target key start
LH: loop header
LB: loop body
LE: loop exit
PB: predicated region body
PF: predicated region fallthrough
CT: control target
= control target key end

     0   :  { %s2047_s12 = smov 0   ;;  %s2942_s0 = inlined_call_operand.vmem [shape: bf16[1024,36], index: 0, kind: input, shape index: {}]   ;;  %s2943_s1 = inlined_call_operand.vmem [shape: bf16[36,128], index: 1, kind: input, shape index: {}]   ;;  %s2944_s2 = inlined_call_operand.vmem [shape: f32[8,128], index: 2, kind: input, shape index: {}]   ;;  %s2945_s3 = inlined_call_operand.vmem [shape: f32[1024,128], index: 3, kind: output, shape index: {}]  }
   0x1 LB: > { %s1655_s13 = sadd.s32 4294967295, %s2025_s12   ;;  %p1659_p0 = scmp.ge.s32.totalorder %s2025_s12, 1  ;;  %s2025_s12 = sphi %s2047_s12, %s13_s12  }
   0x2   : > { %p138_p1 = scmp.lt.s32.totalorder %s2025_s12, 3 }
   0x4   : > { %p139_p2 = pnand %p1659_p0, %p138_p1 }
   0x6   : > { %142 = sbr.rel (%p139_p2) target bundleno = 431 (0x1af), region = 32 }
   0xd   : > { %v1854_v0 = vld [vmem:[%s2943_s1] sm:$0xff]   ;;  %v1855_v1 = vld [vmem:[%s2943_s1 + $0x8] sm:$0xff]   ;;  %s1660_s18 = sshll.u32 %s1655_s13, 6  ;;  %v1856_v2 = vld [vmem:[%s2943_s1 + $0x10] ss:$0 sps:$4 sm:$0x33]   ;;  %v823_v46 = vlaneseq }
   0xe   : > { %1768 = vmatprep.subr.bf16.mxu0 %v1854_v0  ;;  %1838 = vmatprep.subr.bf16.mxu1 %v1854_v0  ;;  %p163_p3 = scmp.lt.s32.totalorder %s1660_s18, 127  ;;  %vm516_vm0 = vcmask 1041408   ;;  %vm419_vm1 = vcmask 293888   ;;  %v809_v36 = vld [vmem:[%s2944_s2] sm:$0x1] }
   0xf   : > { %1769 = vmatpush3.bf16.msra.mxu0 %v1854_v0  ;;  %1841 = vmatpush3.bf16.msra.mxu1 %v1854_v0  ;;  %v518_v3 = vsel %vm516_vm0, %v1856_v2, 0  ;;  %v810_v37 = vmul.f32 0.0017301039, %v809_v36  ;;  %v811_v38 = vld [vmem:[%s2944_s2 + $0x1] sm:$0x1]  ;;  %v824_v48 = vshrl.u32 %v823_v46, 7 }
  0x10   : > { %1770 = vmatprep.subr.bf16.mxu0 %v1855_v1  ;;  %1839 = vmatprep.subr.bf16.mxu1 %v1855_v1  ;;  %s2957_s18 = smov (!%p163_p3, %s1660_s18), 127  ;;  %v812_v39 = vmul.f32 0.0017301039, %v811_v38  ;;  %v818_v45 = vld [vmem:[%s2944_s2 + $0x2] sm:$0x1] }
  0x11   : > { %s1661_s21 = sshll.u32 %s2957_s18, 2  ;;  %v813_v40 = vmul.f32 %v810_v37, %v810_v37  ;;  %v820_v50 = vld [vmem:[%s2944_s2 + $0x3] sm:$0x1]  ;;  %v825_v51 = vsub.s32 0, %v824_v48  ;;  %s1663_s6 = sshll.u32 %s2957_s18, 3 }
  0x12   : > { %s2070_s24 = scalar_lea.vmem %s2942_s0, %s1661_s21  ;;  %s2287_s9 = scalar_lea.vmem %s2945_s3, %s1663_s6 }
  0x13   : > { %1771 = vmatpush3.bf16.msra.mxu0 %v1855_v1  ;;  %1842 = vmatpush3.bf16.msra.mxu1 %v1855_v1  ;;  %v1857_v4 = vld [vmem:[%s2070_s24] sm:$0xff]   ;;  %v1859_v6 = vld [vmem:[%s2070_s24 + $0x8] sm:$0xff]   ;;  %v1861_v8 = vld [vmem:[%s2070_s24 + $0x10] sm:$0xff]   ;;  %v814_v41 = vsub.f32 %v812_v39, %v813_v40 }
  0x14   : > { %1844 = vmatprep.subr.msk.bf16.mxu0 %vm516_vm0, %v1856_v2  ;;  %1845 = vmatprep.subr.msk.bf16.mxu1 %vm516_vm0, %v1856_v2  ;;  %v1858_v5 = vld [vmem:[%s2070_s24 + $0x80] sm:$0xff]   ;;  %v1860_v7 = vld [vmem:[%s2070_s24 + $0x88] sm:$0xff]   ;;  %v1862_v9 = vld [vmem:[%s2070_s24 + $0x90] sm:$0xff]  }
  0x15   : > { %1774 = vmatprep.mubr.msk.bf16.mxu0 %vm419_vm1, %v1857_v4  ;;  %1806 = vmatprep.mubr.msk.bf16.mxu1 %vm419_vm1, %v1858_v5  ;;  %v1863_v10 = vld [vmem:[%s2070_s24 + $0x18] sm:$0xff]   ;;  %v1865_v12 = vld [vmem:[%s2070_s24 + $0x20] sm:$0xff]   ;;  %v1867_v14 = vld [vmem:[%s2070_s24 + $0x28] sm:$0xff]   ;;  %v815_v42 = vmax.f32 %v814_v41, 0.0 }
  0x16   : > { %v1864_v11 = vld [vmem:[%s2070_s24 + $0x98] sm:$0xff]   ;;  %v1866_v13 = vld [vmem:[%s2070_s24 + $0xa0] sm:$0xff]   ;;  %v1868_v15 = vld [vmem:[%s2070_s24 + $0xa8] sm:$0xff]  }
  0x17   : > { %1773 = vmatpush3.bf16.msra.mxu0 %v518_v3  ;;  %1843 = vmatpush3.bf16.msra.mxu1 %v518_v3  ;;  %v1869_v16 = vld [vmem:[%s2070_s24 + $0x30] sm:$0xff]   ;;  %v1871_v18 = vld [vmem:[%s2070_s24 + $0x38] sm:$0xff]   ;;  %v1873_v20 = vld [vmem:[%s2070_s24 + $0x40] sm:$0xff]   ;;  %v816_v43 = vadd.f32 1e-05, %v815_v42 }
  0x18   : > { %v1870_v17 = vld [vmem:[%s2070_s24 + $0xb0] sm:$0xff]   ;;  %v1872_v19 = vld [vmem:[%s2070_s24 + $0xb8] sm:$0xff]   ;;  %v1874_v21 = vld [vmem:[%s2070_s24 + $0xc0] sm:$0xff]  }
  0x19   : > { %v1875_v22 = vld [vmem:[%s2070_s24 + $0x48] sm:$0xff]   ;;  %v1877_v24 = vld [vmem:[%s2070_s24 + $0x50] sm:$0xff]   ;;  %v1879_v26 = vld [vmem:[%s2070_s24 + $0x58] sm:$0xff]   ;;  %1889 = vrsqrt.f32 %v816_v43 }
  0x1a   : > { %1775 = vmatmul.mubr.msk.bf16.vlgmr.msra.gmra.mrb[0].mxu0 %vm419_vm1, %v1859_v6  ;;  %1807 = vmatmul.mubr.msk.bf16.vlgmr.msra.gmra.mrb[0].mxu1 %vm419_vm1, %v1860_v7  ;;  %v1876_v23 = vld [vmem:[%s2070_s24 + $0xc8] sm:$0xff]   ;;  %v1878_v25 = vld [vmem:[%s2070_s24 + $0xd0] sm:$0xff]   ;;  %v1880_v27 = vld [vmem:[%s2070_s24 + $0xd8] sm:$0xff]  }
  0x1b   : > { %1778 = vmatprep.mubr.msk.bf16.mxu0 %vm419_vm1, %v1861_v8  ;;  %1810 = vmatprep.mubr.msk.bf16.mxu1 %vm419_vm1, %v1862_v9  ;;  %v1881_v28 = vld [vmem:[%s2070_s24 + $0x60] sm:$0xff]   ;;  %v1883_v30 = vld [vmem:[%s2070_s24 + $0x68] sm:$0xff]   ;;  %v1885_v32 = vld [vmem:[%s2070_s24 + $0x70] sm:$0xff]  }
  0x1c   : > { %v1882_v29 = vld [vmem:[%s2070_s24 + $0xe0] sm:$0xff]   ;;  %v1884_v31 = vld [vmem:[%s2070_s24 + $0xe8] sm:$0xff]   ;;  %v1886_v33 = vld [vmem:[%s2070_s24 + $0xf0] sm:$0xff]  }
  0x1d   : > { %v1887_v34 = vld [vmem:[%s2070_s24 + $0x78] sm:$0xff]  }
  0x1e   : > { %v1888_v35 = vld [vmem:[%s2070_s24 + $0xf8] sm:$0xff]  }
  0x22   : > { %1779 = vmatmul.mubr.msk.bf16.gmra.mrb[4].mxu0 %vm419_vm1, %v1863_v10  ;;  %1811 = vmatmul.mubr.msk.bf16.gmra.mrb[4].mxu1 %vm419_vm1, %v1864_v11 }
  0x23   : > { %1782 = vmatprep.mubr.msk.bf16.mxu0 %vm419_vm1, %v1865_v12  ;;  %1814 = vmatprep.mubr.msk.bf16.mxu1 %vm419_vm1, %v1866_v13  ;;  %v1890_v44 = vpop.eup %1889 }
  0x24   : > { %v819_v47 = vmul.f32 %v1890_v44, %v818_v45 }
  0x26   : > { %v821_v49 = vmul.f32 %v819_v47, %v810_v37  ;;  %v2148_v53 = vrot.slane %v819_v47, %v825_v51 }
  0x28   : > { %v822_v52 = vsub.f32 %v820_v50, %v821_v49 }
  0x2a   : > { %1783 = vmatmul.mubr.msk.bf16.gmra.mrb[8].mxu0 %vm419_vm1, %v1867_v14  ;;  %1815 = vmatmul.mubr.msk.bf16.gmra.mrb[8].mxu1 %vm419_vm1, %v1868_v15  ;;  %v2150_v54 = vrot.slane %v822_v52, %v825_v51 }
  0x2b   : > { %1786 = vmatprep.mubr.msk.bf16.mxu0 %vm419_vm1, %v1869_v16  ;;  %1818 = vmatprep.mubr.msk.bf16.mxu1 %vm419_vm1, %v1870_v17 }
  0x32   : > { %1787 = vmatmul.mubr.msk.bf16.gmra.mrb[12].mxu0 %vm419_vm1, %v1871_v18  ;;  %1819 = vmatmul.mubr.msk.bf16.gmra.mrb[12].mxu1 %vm419_vm1, %v1872_v19 }
  0x33   : > { %1790 = vmatprep.mubr.msk.bf16.mxu0 %vm419_vm1, %v1873_v20  ;;  %1822 = vmatprep.mubr.msk.bf16.mxu1 %vm419_vm1, %v1874_v21 }
  0x3a   : > { %1791 = vmatmul.mubr.msk.bf16.gmra.mrb[16].mxu0 %vm419_vm1, %v1875_v22  ;;  %1823 = vmatmul.mubr.msk.bf16.gmra.mrb[16].mxu1 %vm419_vm1, %v1876_v23 }
  0x3b   : > { %1794 = vmatprep.mubr.msk.bf16.mxu0 %vm419_vm1, %v1877_v24  ;;  %1826 = vmatprep.mubr.msk.bf16.mxu1 %vm419_vm1, %v1878_v25 }
  0x42   : > { %1795 = vmatmul.mubr.msk.bf16.gmra.mrb[20].mxu0 %vm419_vm1, %v1879_v26  ;;  %1827 = vmatmul.mubr.msk.bf16.gmra.mrb[20].mxu1 %vm419_vm1, %v1880_v27 }
  0x43   : > { %1798 = vmatprep.mubr.msk.bf16.mxu0 %vm419_vm1, %v1881_v28  ;;  %1830 = vmatprep.mubr.msk.bf16.mxu1 %vm419_vm1, %v1882_v29 }
  0x4a   : > { %1799 = vmatmul.mubr.msk.bf16.gmra.mrb[24].mxu0 %vm419_vm1, %v1883_v30  ;;  %1831 = vmatmul.mubr.msk.bf16.gmra.mrb[24].mxu1 %vm419_vm1, %v1884_v31 }
  0x4b   : > { %1802 = vmatprep.mubr.msk.bf16.mxu0 %vm419_vm1, %v1885_v32  ;;  %1834 = vmatprep.mubr.msk.bf16.mxu1 %vm419_vm1, %v1886_v33 }
  0x52   : > { %1803 = vmatmul.mubr.msk.bf16.gmra.mrb[28].mxu0 %vm419_vm1, %v1887_v34  ;;  %1835 = vmatmul.mubr.msk.bf16.gmra.mrb[28].mxu1 %vm419_vm1, %v1888_v35 }
  0xed   : > { %v1776_v55 = vpop.f32.mrb[0].mxu0  ;;  %v1808_v56 = vpop.f32.mrb[0].mxu1 }
  0xee   : > { %v829_v57 = vmul.f32 %v1776_v55, %v2148_v53  ;;  %v861_v58 = vmul.f32 %v1808_v56, %v2148_v53  ;;  %v554_v59 = vpop.f32.mrb[1].mxu0  ;;  %v682_v60 = vpop.f32.mrb[1].mxu1 }
  0xef   : > { %v827_v61 = vmul.f32 %v2148_v53, %v554_v59  ;;  %v859_v62 = vmul.f32 %v2148_v53, %v682_v60  ;;  %v1777_v63 = vpop.f32.mrb[2].mxu0  ;;  %v1809_v0 = vpop.f32.mrb[2].mxu1 }
  0xf0   : > { %v897_v1 = vadd.f32 %v2150_v54, %v829_v57  ;;  %v929_v2 = vadd.f32 %v2150_v54, %v861_v58  ;;  %v830_v3 = vmul.f32 %v1777_v63, %v2148_v53  ;;  %v862_v4 = vmul.f32 %v1809_v0, %v2148_v53  ;;  %v557_v5 = vpop.f32.mrb[3].mxu0  ;;  %v685_v6 = vpop.f32.mrb[3].mxu1 }
  0xf1   : > { %v2161_v7 = vadd.f32 %v2150_v54, %v827_v61  ;;  %v2164_v8 = vadd.f32 %v2150_v54, %v859_v62  ;;  %v828_v9 = vmul.f32 %v2148_v53, %v557_v5  ;;  %v860_v14 = vmul.f32 %v2148_v53, %v685_v6 }
  0xf2   : > { %v1025_v10 = vmul.f32 0.044715, %v897_v1  ;;  %v1057_v11 = vmul.f32 0.044715, %v929_v2  ;;  %v2171_v17 = vadd.f32 %v2150_v54, %v830_v3  ;;  %v2174_v18 = vadd.f32 %v2150_v54, %v862_v4 }
  0xf3   : > { %v1023_v12 = vmul.f32 0.044715, %v2161_v7  ;;  %v1055_v13 = vmul.f32 0.044715, %v2164_v8  ;;  %v2179_v21 = vadd.f32 %v2150_v54, %v828_v9  ;;  %v2182_v29 = vmul.f32 0.5, %v897_v1 }
  0xf4   : > { %v1089_v15 = vmul.f32 %v1025_v10, %v897_v1  ;;  %v1121_v16 = vmul.f32 %v1057_v11, %v929_v2  ;;  %v1026_v26 = vmul.f32 0.044715, %v2171_v17  ;;  %v1058_v32 = vmul.f32 0.044715, %v2174_v18 }
  0xf5   : > { %v1087_v19 = vmul.f32 %v1023_v12, %v2161_v7  ;;  %v1119_v20 = vmul.f32 %v1055_v13, %v2164_v8  ;;  %v1780_v22 = vpop.f32.mrb[4].mxu0  ;;  %v1812_v23 = vpop.f32.mrb[4].mxu1  ;;  %v2189_v38 = vadd.f32 %v2150_v54, %v860_v14  ;;  %v1024_v44 = vmul.f32 0.044715, %v2179_v21 }
  0xf6   : > { %v1153_v24 = vmul.f32 %v1089_v15, %v897_v1  ;;  %v1185_v25 = vmul.f32 %v1121_v16, %v929_v2  ;;  %v570_v27 = vpop.f32.mrb[5].mxu0  ;;  %v698_v28 = vpop.f32.mrb[5].mxu1  ;;  %v1090_v37 = vmul.f32 %v1026_v26, %v2171_v17  ;;  %v1122_v43 = vmul.f32 %v1058_v32, %v2174_v18 }
  0xf7   : > { %v1151_v30 = vmul.f32 %v1087_v19, %v2161_v7  ;;  %v1183_v31 = vmul.f32 %v1119_v20, %v2164_v8  ;;  %v1781_v33 = vpop.f32.mrb[6].mxu0  ;;  %v1813_v34 = vpop.f32.mrb[6].mxu1  ;;  %v2199_v46 = vmul.f32 0.5, %v929_v2  ;;  %v1088_v52 = vmul.f32 %v1024_v44, %v2179_v21 }
  0xf8   : > { %v1217_v35 = vadd.f32 %v1153_v24, %v897_v1  ;;  %v1249_v36 = vadd.f32 %v1185_v25, %v929_v2  ;;  %v2191_v39 = vpop.f32.mrb[7].mxu0  ;;  %v2193_v40 = vpop.f32.mrb[7].mxu1  ;;  %v1154_v48 = vmul.f32 %v1090_v37, %v2171_v17  ;;  %v1186_v51 = vmul.f32 %v1122_v43, %v2174_v18 }
  0xf9   : > { %v1215_v41 = vadd.f32 %v1151_v30, %v2161_v7  ;;  %v1247_v42 = vadd.f32 %v1183_v31, %v2164_v8  ;;  %v1056_v56 = vmul.f32 0.044715, %v2189_v38  ;;  %v833_v57 = vmul.f32 %v1780_v22, %v2148_v53 }
  0xfa   : > { %v1281_v45 = vmul.f32 0.7978846, %v1217_v35  ;;  %v1313_v47 = vmul.f32 0.7978846, %v1249_v36  ;;  %v1218_v55 = vadd.f32 %v1154_v48, %v2171_v17  ;;  %v1250_v58 = vadd.f32 %v1186_v51, %v2174_v18 }
  0xfb   : > { %v1279_v49 = vmul.f32 0.7978846, %v1215_v41  ;;  %v1311_v50 = vmul.f32 0.7978846, %v1247_v42  ;;  %v1152_v59 = vmul.f32 %v1088_v52, %v2179_v21  ;;  %v865_v60 = vmul.f32 %v1812_v23, %v2148_v53 }
  0xfc   : > { %1891 = vtanh.f32 %v1281_v45  ;;  %v1282_v63 = vmul.f32 0.7978846, %v1218_v55  ;;  %v1120_v0 = vmul.f32 %v1056_v56, %v2189_v38  ;;  %v2216_v1 = vadd.f32 %v2150_v54, %v833_v57 }
  0xfd   : > { %1893 = vtanh.f32 %v1313_v47  ;;  %v2210_v61 = vpop.f32.mrb[8].mxu0  ;;  %v2212_v62 = vpop.f32.mrb[8].mxu1  ;;  %v1314_v4 = vmul.f32 0.7978846, %v1250_v58  ;;  %v1216_v5 = vadd.f32 %v1152_v59, %v2179_v21  ;;  %v2224_v6 = vadd.f32 %v2150_v54, %v865_v60 }
  0xfe   : > { %1895 = vtanh.f32 %v1279_v49  ;;  %v2218_v2 = vpop.f32.mrb[9].mxu0  ;;  %v2220_v3 = vpop.f32.mrb[9].mxu1  ;;  %v2231_v11 = vmul.f32 0.5, %v2161_v7  ;;  %v1184_v12 = vmul.f32 %v1120_v0, %v2189_v38  ;;  %v1029_v13 = vmul.f32 0.044715, %v2216_v1 }
  0xff   : > { %1897 = vtanh.f32 %v1311_v50  ;;  %v2226_v9 = vpop.f32.mrb[10].mxu0  ;;  %v2228_v10 = vpop.f32.mrb[10].mxu1  ;;  %v991_v16 = vmul.f32 0.5, %v2164_v8  ;;  %v1280_v19 = vmul.f32 0.7978846, %v1216_v5  ;;  %v831_v23 = vmul.f32 %v2148_v53, %v570_v27 }
 0x100   : > { %1899 = vtanh.f32 %v1282_v63  ;;  %v2235_v14 = vpop.f32.mrb[11].mxu0  ;;  %v2237_v15 = vpop.f32.mrb[11].mxu1  ;;  %v1061_v20 = vmul.f32 0.044715, %v2224_v6  ;;  %v1248_v22 = vadd.f32 %v1184_v12, %v2189_v38  ;;  %v1093_v7 = vmul.f32 %v1029_v13, %v2216_v1 }
 0x101   : > { %1901 = vtanh.f32 %v1314_v4  ;;  %v863_v24 = vmul.f32 %v2148_v53, %v698_v28  ;;  %v834_v26 = vmul.f32 %v1781_v33, %v2148_v53  ;;  %v866_v8 = vmul.f32 %v1813_v34, %v2148_v53 }
 0x102   : > { %1903 = vtanh.f32 %v1280_v19  ;;  %v1125_v25 = vmul.f32 %v1061_v20, %v2224_v6  ;;  %v1312_v30 = vmul.f32 0.7978846, %v1248_v22  ;;  %v1157_v31 = vmul.f32 %v1093_v7, %v2216_v1 }
 0x103   : > { %v2250_v32 = vadd.f32 %v2150_v54, %v831_v23  ;;  %v2253_v35 = vadd.f32 %v2150_v54, %v863_v24  ;;  %v962_v27 = vmul.f32 0.5, %v2171_v17  ;;  %v994_v28 = vmul.f32 0.5, %v2174_v18 }
 0x104   : > { %v2259_v36 = vmul.f32 0.5, %v2179_v21  ;;  %v1189_v33 = vmul.f32 %v1125_v25, %v2224_v6  ;;  %1905 = vtanh.f32 %v1312_v30  ;;  %v1221_v42 = vadd.f32 %v1157_v31, %v2216_v1 }
 0x105   : > { %v2262_v34 = vpop.f32.mrb[12].mxu0  ;;  %v2264_v37 = vpop.f32.mrb[12].mxu1  ;;  %v1027_v43 = vmul.f32 0.044715, %v2250_v32  ;;  %v2269_v44 = vadd.f32 %v2150_v54, %v834_v26  ;;  %v1059_v48 = vmul.f32 0.044715, %v2253_v35  ;;  %v2278_v49 = vadd.f32 %v2150_v54, %v866_v8 }
 0x106   : > { %v1892_v41 = vpop.eup %1891  ;;  %v2271_v17 = vpop.f32.mrb[13].mxu0  ;;  %v1253_v47 = vadd.f32 %v1189_v33, %v2224_v6  ;;  %v1285_v56 = vmul.f32 0.7978846, %v1221_v42  ;;  %v832_v58 = vmul.f32 %v2148_v53, %v2191_v39  ;;  %v992_v31 = vmul.f32 0.5, %v2189_v38 }
 0x107   : > { %v2273_v18 = vpop.f32.mrb[13].mxu1  ;;  %v1894_v21 = vpop.eup %1893  ;;  %v1409_v45 = vadd.f32 1.0, %v1892_v41  ;;  %v1091_v57 = vmul.f32 %v1027_v43, %v2250_v32  ;;  %v1123_v12 = vmul.f32 %v1059_v48, %v2253_v35  ;;  %v1062_v33 = vmul.f32 0.044715, %v2278_v49 }
 0x108   : > { %v2280_v50 = vpop.f32.mrb[14].mxu0  ;;  %v2282_v51 = vpop.f32.mrb[14].mxu1  ;;  %v1441_v55 = vadd.f32 1.0, %v1894_v21  ;;  %v1317_v5 = vmul.f32 0.7978846, %v1253_v47  ;;  %1907 = vtanh.f32 %v1285_v56 }
 0x109   : > { %v1896_v52 = vpop.eup %1895  ;;  %v2292_v59 = vpop.f32.mrb[15].mxu0  ;;  %v1473_v0 = vmul.f32 %v1409_v45, %v2182_v29  ;;  %v1155_v39 = vmul.f32 %v1091_v57, %v2250_v32  ;;  %v1187_v29 = vmul.f32 %v1123_v12, %v2253_v35  ;;  %v1126_v48 = vmul.f32 %v1062_v33, %v2278_v49 }
 0x10a   : > { %v2294_v60 = vpop.f32.mrb[15].mxu1  ;;  %v1898_v63 = vpop.eup %1897  ;;  %v1407_v4 = vadd.f32 1.0, %v1896_v52  ;;  %v1505_v19 = vmul.f32 %v1441_v55, %v2199_v46  ;;  %1909 = vtanh.f32 %v1317_v5  ;;  %v1030_v46 = vmul.f32 0.044715, %v2269_v44 }
 0x10b   : > { %v1900_v13 = vpop.eup %1899  ;;  %v1439_v20 = vadd.f32 1.0, %v1898_v63  ;;  %1537 = vst [vmem:[%s2287_s9 + $0x10] sm:$0xff] %v1473_v0  ;;  %v1219_v26 = vadd.f32 %v1155_v39, %v2250_v32  ;;  %v2323_v52 = vadd.f32 %v2150_v54, %v832_v58  ;;  %v864_v55 = vmul.f32 %v2148_v53, %v2193_v40 }
 0x10c   : > { %v1902_v22 = vpop.eup %1901  ;;  %v1471_v7 = vmul.f32 %v1407_v4, %v2231_v11  ;;  %v1410_v23 = vadd.f32 1.0, %v1900_v13  ;;  %1569 = vst [vmem:[%s2287_s9 + $0x110] sm:$0xff] %v1505_v19  ;;  %v1251_v11 = vadd.f32 %v1187_v29, %v2253_v35  ;;  %v1094_v45 = vmul.f32 %v1030_v46, %v2269_v44 }
 0x10d   : > { %v1503_v24 = vmul.f32 %v1439_v20, %v991_v16  ;;  %v1442_v25 = vadd.f32 1.0, %v1902_v22  ;;  %v1904_v8 = vpop.eup %1903  ;;  %v2310_v41 = vpop.f32.mrb[16].mxu0  ;;  %v1283_v21 = vmul.f32 0.7978846, %v1219_v26  ;;  %v837_v4 = vmul.f32 %v2210_v61, %v2148_v53 }
 0x10e   : > { %1535 = vst [vmem:[%s2287_s9] sm:$0xff] %v1471_v7  ;;  %v1474_v30 = vmul.f32 %v1410_v23, %v962_v27  ;;  %v2312_v42 = vpop.f32.mrb[16].mxu1  ;;  %v1408_v43 = vadd.f32 1.0, %v1904_v8  ;;  %v2316_v47 = vpop.f32.mrb[17].mxu0  ;;  %v1315_v38 = vmul.f32 0.7978846, %v1251_v11  ;;  %v1158_v0 = vmul.f32 %v1094_v45, %v2269_v44 }
 0x10f   : > { %1567 = vst [vmem:[%s2287_s9 + $0x100] sm:$0xff] %v1503_v24  ;;  %v1506_v16 = vmul.f32 %v1442_v25, %v994_v28  ;;  %v2318_v27 = vpop.f32.mrb[17].mxu1  ;;  %v2327_v28 = vpop.f32.mrb[18].mxu0  ;;  %1911 = vtanh.f32 %v1283_v21  ;;  %v965_v40 = vmul.f32 0.5, %v2216_v1  ;;  %v1190_v13 = vmul.f32 %v1126_v48, %v2278_v49 }
 0x110   : > { %1538 = vst [vmem:[%s2287_s9 + $0x18] sm:$0xff] %v1474_v30  ;;  %v2329_v56 = vpop.f32.mrb[18].mxu1  ;;  %v1906_v57 = vpop.eup %1905  ;;  %v1472_v63 = vmul.f32 %v1408_v43, %v2259_v36  ;;  %1913 = vtanh.f32 %v1315_v38  ;;  %v1222_v36 = vadd.f32 %v1158_v0, %v2269_v44  ;;  %v1028_v19 = vmul.f32 0.044715, %v2323_v52 }
 0x111   : > { %1570 = vst [vmem:[%s2287_s9 + $0x118] sm:$0xff] %v1506_v16  ;;  %v2336_v58 = vpop.f32.mrb[19].mxu0  ;;  %v2338_v5 = vpop.f32.mrb[19].mxu1  ;;  %v1440_v12 = vadd.f32 1.0, %v1906_v57  ;;  %v2346_v20 = vadd.f32 %v2150_v54, %v864_v55  ;;  %v2349_v61 = vadd.f32 %v2150_v54, %v837_v4  ;;  %v997_v22 = vmul.f32 0.5, %v2224_v6 }
 0x112   : > { %1536 = vst [vmem:[%s2287_s9 + $0x8] sm:$0xff] %v1472_v63  ;;  %v1254_v1 = vadd.f32 %v1190_v13, %v2278_v49  ;;  %v869_v7 = vmul.f32 %v2212_v62, %v2148_v53  ;;  %v1908_v23 = vpop.eup %1907  ;;  %v1286_v29 = vmul.f32 0.7978846, %v1222_v36  ;;  %v1092_v24 = vmul.f32 %v1028_v19, %v2323_v52 }
 0x113   : > { %v1504_v39 = vmul.f32 %v1440_v12, %v992_v31  ;;  %v1060_v25 = vmul.f32 0.044715, %v2346_v20  ;;  %v835_v26 = vmul.f32 %v2148_v53, %v2218_v2  ;;  %v1413_v8 = vadd.f32 1.0, %v1908_v23 }
 0x114   : > { %v1910_v46 = vpop.eup %1909  ;;  %v963_v30 = vmul.f32 0.5, %v2250_v32  ;;  %v1318_v6 = vmul.f32 0.7978846, %v1254_v1  ;;  %v1033_v31 = vmul.f32 0.044715, %v2349_v61  ;;  %1915 = vtanh.f32 %v1286_v29 }
 0x115   : > { %1568 = vst [vmem:[%s2287_s9 + $0x108] sm:$0xff] %v1504_v39  ;;  %v1445_v11 = vadd.f32 1.0, %v1910_v46  ;;  %v1156_v62 = vmul.f32 %v1092_v24, %v2323_v52  ;;  %v1124_v33 = vmul.f32 %v1060_v25, %v2346_v20  ;;  %v2364_v16 = vpop.f32.mrb[20].mxu0  ;;  %v2366_v43 = vpop.f32.mrb[20].mxu1  ;;  %v1477_v2 = vmul.f32 %v1413_v8, %v965_v40 }
 0x116   : > { %1917 = vtanh.f32 %v1318_v6  ;;  %v1097_v21 = vmul.f32 %v1033_v31, %v2349_v61  ;;  %v2370_v32 = vadd.f32 %v2150_v54, %v869_v7  ;;  %v2372_v45 = vpop.f32.mrb[21].mxu0  ;;  %v2374_v38 = vpop.f32.mrb[21].mxu1  ;;  %v2379_v63 = vadd.f32 %v2150_v54, %v835_v26 }
 0x117   : > { %v1509_v48 = vmul.f32 %v1445_v11, %v997_v22  ;;  %v1220_v55 = vadd.f32 %v1156_v62, %v2323_v52  ;;  %v1188_v57 = vmul.f32 %v1124_v33, %v2346_v20  ;;  %v2381_v0 = vpop.f32.mrb[22].mxu0  ;;  %v2383_v4 = vpop.f32.mrb[22].mxu1  ;;  %1541 = vst [vmem:[%s2287_s9 + $0x30] sm:$0xff] %v1477_v2  ;;  %v995_v12 = vmul.f32 0.5, %v2253_v35 }
 0x118   : > { %v1161_v40 = vmul.f32 %v1097_v21, %v2349_v61  ;;  %v1065_v13 = vmul.f32 0.044715, %v2370_v32  ;;  %v867_v36 = vmul.f32 %v2148_v53, %v2220_v3  ;;  %v2391_v19 = vpop.f32.mrb[23].mxu0  ;;  %v2393_v39 = vpop.f32.mrb[23].mxu1  ;;  %v966_v1 = vmul.f32 0.5, %v2269_v44 }
 0x119   : > { %v1912_v22 = vpop.eup %1911  ;;  %1573 = vst [vmem:[%s2287_s9 + $0x130] sm:$0xff] %v1509_v48  ;;  %v1284_v7 = vmul.f32 0.7978846, %v1220_v55  ;;  %v1252_v23 = vadd.f32 %v1188_v57, %v2346_v20  ;;  %v1031_v35 = vmul.f32 0.044715, %v2379_v63  ;;  %v998_v31 = vmul.f32 0.5, %v2278_v49 }
 0x11a   : > { %v1914_v29 = vpop.eup %1913  ;;  %v1411_v24 = vadd.f32 1.0, %v1912_v22  ;;  %v1225_v25 = vadd.f32 %v1161_v40, %v2349_v61  ;;  %v1129_v26 = vmul.f32 %v1065_v13, %v2370_v32  ;;  %v2402_v3 = vadd.f32 %v2150_v54, %v867_v36 }
 0x11b   : > { %v1443_v46 = vadd.f32 1.0, %v1914_v29  ;;  %1919 = vtanh.f32 %v1284_v7  ;;  %v1316_v8 = vmul.f32 0.7978846, %v1252_v23  ;;  %v1095_v44 = vmul.f32 %v1031_v35, %v2379_v63 }
 0x11c   : > { %v1475_v6 = vmul.f32 %v1411_v24, %v963_v30  ;;  %v1289_v11 = vmul.f32 0.7978846, %v1225_v25  ;;  %v1193_v62 = vmul.f32 %v1129_v26, %v2370_v32  ;;  %v1063_v55 = vmul.f32 0.044715, %v2402_v3 }
 0x11d   : > { %v2407_v33 = vpop.f32.mrb[24].mxu0  ;;  %v2409_v2 = vpop.f32.mrb[24].mxu1  ;;  %v1507_v21 = vmul.f32 %v1443_v46, %v995_v12  ;;  %1921 = vtanh.f32 %v1316_v8  ;;  %v1159_v48 = vmul.f32 %v1095_v44, %v2379_v63  ;;  %v838_v30 = vmul.f32 %v2226_v9, %v2148_v53 }
 0x11e   : > { %v2413_v57 = vpop.f32.mrb[25].mxu0  ;;  %v2415_v40 = vpop.f32.mrb[25].mxu1  ;;  %1539 = vst [vmem:[%s2287_s9 + $0x20] sm:$0xff] %v1475_v6  ;;  %1923 = vtanh.f32 %v1289_v11  ;;  %v1257_v49 = vadd.f32 %v1193_v62, %v2370_v32  ;;  %v870_v13 = vmul.f32 %v2228_v10, %v2148_v53  ;;  %v1127_v23 = vmul.f32 %v1063_v55, %v2402_v3 }
 0x11f   : > { %v2423_v12 = vpop.f32.mrb[26].mxu0  ;;  %v2425_v36 = vpop.f32.mrb[26].mxu1  ;;  %1571 = vst [vmem:[%s2287_s9 + $0x120] sm:$0xff] %v1507_v21  ;;  %v1223_v7 = vadd.f32 %v1159_v48, %v2379_v63  ;;  %v836_v35 = vmul.f32 %v2148_v53, %v2235_v14  ;;  %v868_v29 = vmul.f32 %v2148_v53, %v2237_v15  ;;  %v2439_v46 = vadd.f32 %v2150_v54, %v838_v30 }
 0x120   : > { %v1916_v22 = vpop.eup %1915  ;;  %v2434_v9 = vpop.f32.mrb[27].mxu0  ;;  %v1321_v26 = vmul.f32 0.7978846, %v1257_v49  ;;  %v2442_v8 = vadd.f32 %v2150_v54, %v870_v13  ;;  %v1191_v14 = vmul.f32 %v1127_v23, %v2402_v3  ;;  %v964_v62 = vmul.f32 0.5, %v2323_v52 }
 0x121   : > { %v2436_v24 = vpop.f32.mrb[27].mxu1  ;;  %v1918_v10 = vpop.eup %1917  ;;  %v1414_v25 = vadd.f32 1.0, %v1916_v22  ;;  %v1287_v6 = vmul.f32 0.7978846, %v1223_v7  ;;  %v2446_v15 = vadd.f32 %v2150_v54, %v836_v35  ;;  %v1034_v21 = vmul.f32 0.044715, %v2439_v46 }
 0x122   : > { %v1446_v44 = vadd.f32 1.0, %v1918_v10  ;;  %1925 = vtanh.f32 %v1321_v26  ;;  %v996_v55 = vmul.f32 0.5, %v2346_v20  ;;  %v1255_v49 = vadd.f32 %v1191_v14, %v2402_v3 }
 0x123   : > { %v1478_v11 = vmul.f32 %v1414_v25, %v966_v1  ;;  %1927 = vtanh.f32 %v1287_v6  ;;  %v969_v30 = vmul.f32 0.5, %v2349_v61  ;;  %v1098_v13 = vmul.f32 %v1034_v21, %v2439_v46 }
 0x124   : > { %v1510_v48 = vmul.f32 %v1446_v44, %v998_v31  ;;  %v1066_v22 = vmul.f32 0.044715, %v2442_v8  ;;  %v1032_v1 = vmul.f32 0.044715, %v2446_v15  ;;  %v1001_v31 = vmul.f32 0.5, %v2370_v32 }
 0x125   : > { %1542 = vst [vmem:[%s2287_s9 + $0x38] sm:$0xff] %v1478_v11  ;;  %v2457_v7 = vpop.f32.mrb[28].mxu0  ;;  %v1920_v52 = vpop.eup %1919  ;;  %v1319_v23 = vmul.f32 0.7978846, %v1255_v49  ;;  %v2462_v20 = vadd.f32 %v2150_v54, %v868_v29  ;;  %v841_v35 = vmul.f32 %v2262_v34, %v2148_v53  ;;  %v1162_v26 = vmul.f32 %v1098_v13, %v2439_v46 }
 0x126   : > { %1574 = vst [vmem:[%s2287_s9 + $0x138] sm:$0xff] %v1510_v48  ;;  %v2466_v61 = vpop.f32.mrb[28].mxu1  ;;  %v2468_v10 = vpop.f32.mrb[29].mxu0  ;;  %v1412_v25 = vadd.f32 1.0, %v1920_v52  ;;  %v1130_v44 = vmul.f32 %v1066_v22, %v2442_v8  ;;  %v1096_v6 = vmul.f32 %v1032_v1, %v2446_v15  ;;  %v873_v21 = vmul.f32 %v2264_v37, %v2148_v53 }
 0x127   : > { %2946 = vst [vmem:[#allocation2_spill] sm:$0xff] %v2468_v10  ;;  %v2473_v14 = vpop.f32.mrb[29].mxu1  ;;  %v2475_v32 = vpop.f32.mrb[30].mxu0  ;;  %1929 = vtanh.f32 %v1319_v23  ;;  %v1064_v34 = vmul.f32 0.044715, %v2462_v20  ;;  %v2479_v11 = vadd.f32 %v2150_v54, %v841_v35  ;;  %v1226_v52 = vadd.f32 %v1162_v26, %v2439_v46 }
 0x128   : > { %2947 = vst [vmem:[#allocation3_spill] sm:$0xff] %v2473_v14  ;;  %2948 = vst [vmem:[#allocation4_spill] sm:$0xff] %v2475_v32  ;;  %v1922_v29 = vpop.eup %1921  ;;  %v2483_v48 = vpop.f32.mrb[30].mxu1  ;;  %v1476_v22 = vmul.f32 %v1412_v25, %v964_v62  ;;  %v1194_v23 = vmul.f32 %v1130_v44, %v2442_v8  ;;  %v967_v35 = vmul.f32 0.5, %v2379_v63  ;;  %v1160_v10 = vmul.f32 %v1096_v6, %v2446_v15 }
 0x129   : > { %2949 = vst [vmem:[#allocation5_spill] sm:$0xff] %v2483_v48  ;;  %v2485_v49 = vpop.f32.mrb[31].mxu0  ;;  %v1924_v13 = vpop.eup %1923  ;;  %v1444_v1 = vadd.f32 1.0, %v1922_v29  ;;  %v1128_v37 = vmul.f32 %v1064_v34, %v2462_v20  ;;  %v1290_v48 = vmul.f32 0.7978846, %v1226_v52 }
 0x12a   : > { %2950 = vst [vmem:[#allocation6_spill] sm:$0xff] %v2485_v49  ;;  %v2489_v32 = vpop.f32.mrb[31].mxu1  ;;  %v1417_v14 = vadd.f32 1.0, %v1924_v13  ;;  %1540 = vst [vmem:[%s2287_s9 + $0x28] sm:$0xff] %v1476_v22  ;;  %v1258_v62 = vadd.f32 %v1194_v23, %v2442_v8  ;;  %v1037_v25 = vmul.f32 0.044715, %v2479_v11  ;;  %v1224_v44 = vadd.f32 %v1160_v10, %v2446_v15 }
 0x12b   : > { %v1508_v49 = vmul.f32 %v1444_v1, %v996_v55  ;;  %v1192_v29 = vmul.f32 %v1128_v37, %v2462_v20  ;;  %v2500_v13 = vadd.f32 %v2150_v54, %v873_v21  ;;  %1931 = vtanh.f32 %v1290_v48 }
 0x12c   : > { %v1481_v26 = vmul.f32 %v1417_v14, %v969_v30  ;;  %v1926_v63 = vpop.eup %1925  ;;  %v1322_v6 = vmul.f32 0.7978846, %v1258_v62  ;;  %v1101_v34 = vmul.f32 %v1037_v25, %v2479_v11  ;;  %v839_v55 = vmul.f32 %v2148_v53, %v2271_v17 }
 0x12d   : > { %1572 = vst [vmem:[%s2287_s9 + $0x128] sm:$0xff] %v1508_v49  ;;  %v1928_v22 = vpop.eup %1927  ;;  %v1449_v1 = vadd.f32 1.0, %v1926_v63  ;;  %v999_v30 = vmul.f32 0.5, %v2402_v3  ;;  %v1288_v10 = vmul.f32 0.7978846, %v1224_v44  ;;  %v1256_v14 = vadd.f32 %v1192_v29, %v2462_v20 }
 0x12e   : > { %1545 = vst [vmem:[%s2287_s9 + $0x50] sm:$0xff] %v1481_v26  ;;  %v1415_v21 = vadd.f32 1.0, %v1928_v22  ;;  %1933 = vtanh.f32 %v1322_v6  ;;  %v1165_v49 = vmul.f32 %v1101_v34, %v2479_v11  ;;  %v1069_v48 = vmul.f32 0.044715, %v2500_v13 }
 0x12f   : > { %v1513_v52 = vmul.f32 %v1449_v1, %v1001_v31  ;;  %1935 = vtanh.f32 %v1288_v10  ;;  %v1320_v23 = vmul.f32 0.7978846, %v1256_v14  ;;  %v2512_v17 = vadd.f32 %v2150_v54, %v839_v55 }
 0x130   : > { %v1479_v37 = vmul.f32 %v1415_v21, %v967_v35  ;;  %v1229_v3 = vadd.f32 %v1165_v49, %v2479_v11  ;;  %v1133_v62 = vmul.f32 %v1069_v48, %v2500_v13  ;;  %v871_v25 = vmul.f32 %v2148_v53, %v2273_v18 }
 0x131   : > { %v1930_v26 = vpop.eup %1929  ;;  %1577 = vst [vmem:[%s2287_s9 + $0x150] sm:$0xff] %v1513_v52  ;;  %v970_v44 = vmul.f32 0.5, %v2439_v46  ;;  %1937 = vtanh.f32 %v1320_v23  ;;  %v1035_v31 = vmul.f32 0.044715, %v2512_v17  ;;  %v842_v29 = vmul.f32 %v2280_v50, %v2148_v53 }
 0x132   : > { %1543 = vst [vmem:[%s2287_s9 + $0x40] sm:$0xff] %v1479_v37  ;;  %v1447_v63 = vadd.f32 1.0, %v1930_v26  ;;  %v1293_v35 = vmul.f32 0.7978846, %v1229_v3  ;;  %v1197_v6 = vmul.f32 %v1133_v62, %v2500_v13  ;;  %v2526_v34 = vadd.f32 %v2150_v54, %v871_v25 }
 0x133   : > { %v1099_v18 = vmul.f32 %v1035_v31, %v2512_v17  ;;  %v2530_v55 = vadd.f32 %v2150_v54, %v842_v29  ;;  %v874_v46 = vmul.f32 %v2282_v51, %v2148_v53  ;;  %v840_v50 = vmul.f32 %v2148_v53, %v2292_v59 }
 0x134   : > { %v1511_v22 = vmul.f32 %v1447_v63, %v999_v30  ;;  %v1002_v1 = vmul.f32 0.5, %v2442_v8  ;;  %1939 = vtanh.f32 %v1293_v35  ;;  %v1261_v10 = vadd.f32 %v1197_v6, %v2500_v13 }
 0x135   : > { %v968_v14 = vmul.f32 0.5, %v2446_v15  ;;  %v1163_v21 = vmul.f32 %v1099_v18, %v2512_v17  ;;  %v1067_v49 = vmul.f32 0.044715, %v2526_v34  ;;  %v1038_v48 = vmul.f32 0.044715, %v2530_v55  ;;  %v1932_v52 = vpop.eup %1931 }
 0x136   : > { %1575 = vst [vmem:[%s2287_s9 + $0x140] sm:$0xff] %v1511_v22  ;;  %v1325_v51 = vmul.f32 0.7978846, %v1261_v10  ;;  %v2544_v23 = vadd.f32 %v2150_v54, %v874_v46  ;;  %v2547_v59 = vadd.f32 %v2150_v54, %v840_v50  ;;  %v872_v8 = vmul.f32 %v2148_v53, %v2294_v60 }
 0x137   : > { %v1418_v30 = vadd.f32 1.0, %v1932_v52  ;;  %v1227_v15 = vadd.f32 %v1163_v21, %v2512_v17  ;;  %v1131_v37 = vmul.f32 %v1067_v49, %v2526_v34  ;;  %v1102_v3 = vmul.f32 %v1038_v48, %v2530_v55 }
 0x138   : > { %v1934_v62 = vpop.eup %1933  ;;  %v1000_v25 = vmul.f32 0.5, %v2462_v20  ;;  %v973_v26 = vmul.f32 0.5, %v2479_v11  ;;  %1941 = vtanh.f32 %v1325_v51  ;;  %v1070_v31 = vmul.f32 0.044715, %v2544_v23 }
 0x139   : > { %v1936_v29 = vpop.eup %1935  ;;  %v1482_v63 = vmul.f32 %v1418_v30, %v970_v44  ;;  %v1450_v35 = vadd.f32 1.0, %v1934_v62  ;;  %v1291_v60 = vmul.f32 0.7978846, %v1227_v15  ;;  %v1195_v6 = vmul.f32 %v1131_v37, %v2526_v34 }
 0x13a   : > { %v1416_v18 = vadd.f32 1.0, %v1936_v29  ;;  %v1166_v46 = vmul.f32 %v1102_v3, %v2530_v55  ;;  %v1134_v50 = vmul.f32 %v1070_v31, %v2544_v23  ;;  %v1036_v22 = vmul.f32 0.044715, %v2547_v59 }
 0x13b   : > { %v1938_v20 = vpop.eup %1937  ;;  %1546 = vst [vmem:[%s2287_s9 + $0x58] sm:$0xff] %v1482_v63  ;;  %v1514_v11 = vmul.f32 %v1450_v35, %v1002_v1  ;;  %1943 = vtanh.f32 %v1291_v60  ;;  %v1259_v10 = vadd.f32 %v1195_v6, %v2526_v34  ;;  %v2564_v44 = vadd.f32 %v2150_v54, %v872_v8 }
 0x13c   : > { %v1480_v21 = vmul.f32 %v1416_v18, %v968_v14  ;;  %v1448_v49 = vadd.f32 1.0, %v1938_v20  ;;  %v1230_v48 = vadd.f32 %v1166_v46, %v2530_v55  ;;  %v1198_v52 = vmul.f32 %v1134_v50, %v2544_v23 }
 0x13d   : > { %1578 = vst [vmem:[%s2287_s9 + $0x158] sm:$0xff] %v1514_v11  ;;  %v1005_v51 = vmul.f32 0.5, %v2500_v13  ;;  %v1323_v30 = vmul.f32 0.7978846, %v1259_v10  ;;  %v1100_v15 = vmul.f32 %v1036_v22, %v2547_v59  ;;  %v1068_v1 = vmul.f32 0.044715, %v2564_v44 }
 0x13e   : > { %v1940_v37 = vpop.eup %1939  ;;  %1544 = vst [vmem:[%s2287_s9 + $0x48] sm:$0xff] %v1480_v21  ;;  %v1512_v3 = vmul.f32 %v1448_v49, %v1000_v25  ;;  %v1294_v8 = vmul.f32 0.7978846, %v1230_v48  ;;  %v1262_v14 = vadd.f32 %v1198_v52, %v2544_v23  ;;  %v845_v62 = vmul.f32 %v2310_v41, %v2148_v53 }
 0x13f   : > { %v1421_v31 = vadd.f32 1.0, %v1940_v37  ;;  %1945 = vtanh.f32 %v1323_v30  ;;  %v1164_v29 = vmul.f32 %v1100_v15, %v2547_v59  ;;  %v1132_v13 = vmul.f32 %v1068_v1, %v2564_v44 }
 0x140   : > { %1576 = vst [vmem:[%s2287_s9 + $0x148] sm:$0xff] %v1512_v3  ;;  %1947 = vtanh.f32 %v1294_v8  ;;  %v1326_v63 = vmul.f32 0.7978846, %v1262_v14  ;;  %v2580_v35 = vadd.f32 %v2150_v54, %v845_v62  ;;  %v877_v25 = vmul.f32 %v2312_v42, %v2148_v53 }
 0x141   : > { %v1485_v60 = vmul.f32 %v1421_v31, %v973_v26  ;;  %v1228_v6 = vadd.f32 %v1164_v29, %v2547_v59  ;;  %v1196_v41 = vmul.f32 %v1132_v13, %v2564_v44  ;;  %v843_v18 = vmul.f32 %v2148_v53, %v2316_v47 }
 0x142   : > { %v1942_v46 = vpop.eup %1941  ;;  %v971_v50 = vmul.f32 0.5, %v2512_v17  ;;  %1949 = vtanh.f32 %v1326_v63  ;;  %v1041_v22 = vmul.f32 0.044715, %v2580_v35  ;;  %v2591_v20 = vadd.f32 %v2150_v54, %v877_v25 }
 0x143   : > { %1549 = vst [vmem:[%s2287_s9 + $0x70] sm:$0xff] %v1485_v60  ;;  %v1453_v11 = vadd.f32 1.0, %v1942_v46  ;;  %v1292_v42 = vmul.f32 0.7978846, %v1228_v6  ;;  %v1260_v26 = vadd.f32 %v1196_v41, %v2564_v44  ;;  %v2596_v10 = vadd.f32 %v2150_v54, %v843_v18 }
 0x144   : > { %v1003_v47 = vmul.f32 0.5, %v2526_v34  ;;  %v1105_v21 = vmul.f32 %v1041_v22, %v2580_v35  ;;  %v1073_v17 = vmul.f32 0.044715, %v2591_v20  ;;  %v875_v49 = vmul.f32 %v2148_v53, %v2318_v27 }
 0x145   : > { %v1944_v48 = vpop.eup %1943  ;;  %v1517_v52 = vmul.f32 %v1453_v11, %v1005_v51  ;;  %v974_v30 = vmul.f32 0.5, %v2530_v55  ;;  %1951 = vtanh.f32 %v1292_v42  ;;  %v1324_v15 = vmul.f32 0.7978846, %v1260_v26 }
 0x146   : > { %v1419_v1 = vadd.f32 1.0, %v1944_v48  ;;  %v1169_v37 = vmul.f32 %v1105_v21, %v2580_v35  ;;  %v1137_v3 = vmul.f32 %v1073_v17, %v2591_v20  ;;  %v1039_v34 = vmul.f32 0.044715, %v2596_v10 }
 0x147   : > { %1581 = vst [vmem:[%s2287_s9 + $0x170] sm:$0xff] %v1517_v52  ;;  %1953 = vtanh.f32 %v1324_v15  ;;  %v2609_v8 = vadd.f32 %v2150_v54, %v875_v49  ;;  %v846_v27 = vmul.f32 %v2327_v28, %v2148_v53  ;;  %v878_v55 = vmul.f32 %v2329_v56, %v2148_v53 }
 0x148   : > { %v1483_v51 = vmul.f32 %v1419_v1, %v971_v50  ;;  %v1233_v14 = vadd.f32 %v1169_v37, %v2580_v35  ;;  %v1201_v62 = vmul.f32 %v1137_v3, %v2591_v20  ;;  %v1103_v31 = vmul.f32 %v1039_v34, %v2596_v10 }
 0x149   : > { %v1946_v29 = vpop.eup %1945  ;;  %v1006_v13 = vmul.f32 0.5, %v2544_v23  ;;  %v1071_v63 = vmul.f32 0.044715, %v2609_v8  ;;  %v2621_v25 = vadd.f32 %v2150_v54, %v846_v27  ;;  %v2624_v28 = vadd.f32 %v2150_v54, %v878_v55 }
 0x14a   : > { %v1948_v60 = vpop.eup %1947  ;;  %1547 = vst [vmem:[%s2287_s9 + $0x60] sm:$0xff] %v1483_v51  ;;  %v1451_v56 = vadd.f32 1.0, %v1946_v29  ;;  %v1297_v6 = vmul.f32 0.7978846, %v1233_v14  ;;  %v1265_v41 = vadd.f32 %v1201_v62, %v2591_v20  ;;  %v1167_v18 = vmul.f32 %v1103_v31, %v2596_v10 }
 0x14b   : > { %v1422_v46 = vadd.f32 1.0, %v1948_v60  ;;  %v972_v23 = vmul.f32 0.5, %v2547_v59  ;;  %v1135_v50 = vmul.f32 %v1071_v63, %v2609_v8  ;;  %v1042_v22 = vmul.f32 0.044715, %v2621_v25 }
 0x14c   : > { %v1950_v11 = vpop.eup %1949  ;;  %v1515_v42 = vmul.f32 %v1451_v56, %v1003_v47  ;;  %1955 = vtanh.f32 %v1297_v6  ;;  %v1329_v26 = vmul.f32 0.7978846, %v1265_v41  ;;  %v1231_v21 = vadd.f32 %v1167_v18, %v2596_v10 }
 0x14d   : > { %v1486_v17 = vmul.f32 %v1422_v46, %v974_v30  ;;  %v1454_v49 = vadd.f32 1.0, %v1950_v11  ;;  %v1199_v48 = vmul.f32 %v1135_v50, %v2609_v8  ;;  %v1106_v52 = vmul.f32 %v1042_v22, %v2621_v25 }
 0x14e   : > { %1579 = vst [vmem:[%s2287_s9 + $0x160] sm:$0xff] %v1515_v42  ;;  %v1004_v59 = vmul.f32 0.5, %v2564_v44  ;;  %1957 = vtanh.f32 %v1329_v26  ;;  %v1295_v15 = vmul.f32 0.7978846, %v1231_v21  ;;  %v1074_v1 = vmul.f32 0.044715, %v2624_v28 }
 0x14f   : > { %v1952_v37 = vpop.eup %1951  ;;  %1550 = vst [vmem:[%s2287_s9 + $0x78] sm:$0xff] %v1486_v17  ;;  %v1518_v47 = vmul.f32 %v1454_v49, %v1006_v13  ;;  %v1263_v3 = vadd.f32 %v1199_v48, %v2609_v8  ;;  %v1170_v30 = vmul.f32 %v1106_v52, %v2621_v25  ;;  %v844_v34 = vmul.f32 %v2148_v53, %v2336_v58 }
 0x150   : > { %v1420_v27 = vadd.f32 1.0, %v1952_v37  ;;  %1959 = vtanh.f32 %v1295_v15  ;;  %v1138_v55 = vmul.f32 %v1074_v1, %v2624_v28  ;;  %v876_v44 = vmul.f32 %v2148_v53, %v2338_v5 }
 0x151   : > { %v1954_v51 = vpop.eup %1953  ;;  %1582 = vst [vmem:[%s2287_s9 + $0x178] sm:$0xff] %v1518_v47  ;;  %v1327_v14 = vmul.f32 0.7978846, %v1263_v3  ;;  %v1234_v62 = vadd.f32 %v1170_v30, %v2621_v25  ;;  %v2649_v31 = vadd.f32 %v2150_v54, %v844_v34  ;;  %v849_v29 = vmul.f32 %v2364_v16, %v2148_v53 }
 0x152   : > { %v1484_v58 = vmul.f32 %v1420_v27, %v972_v23  ;;  %v1452_v13 = vadd.f32 1.0, %v1954_v51  ;;  %v1202_v63 = vmul.f32 %v1138_v55, %v2624_v28  ;;  %v2655_v60 = vadd.f32 %v2150_v54, %v876_v44 }
 0x153   : > { %v977_v5 = vmul.f32 0.5, %v2580_v35  ;;  %1961 = vtanh.f32 %v1327_v14  ;;  %v1298_v56 = vmul.f32 0.7978846, %v1234_v62  ;;  %v1040_v6 = vmul.f32 0.044715, %v2649_v31 }
 0x154   : > { %1548 = vst [vmem:[%s2287_s9 + $0x68] sm:$0xff] %v1484_v58  ;;  %v1516_v41 = vmul.f32 %v1452_v13, %v1004_v59  ;;  %v1009_v18 = vmul.f32 0.5, %v2591_v20  ;;  %v1266_v16 = vadd.f32 %v1202_v63, %v2624_v28  ;;  %v1072_v46 = vmul.f32 0.044715, %v2655_v60 }
 0x155   : > { %1963 = vtanh.f32 %v1298_v56  ;;  %v1104_v23 = vmul.f32 %v1040_v6, %v2649_v31  ;;  %v2665_v50 = vadd.f32 %v2150_v54, %v849_v29  ;;  %v881_v35 = vmul.f32 %v2366_v43, %v2148_v53 }
 0x156   : > { %v1956_v22 = vpop.eup %1955  ;;  %1580 = vst [vmem:[%s2287_s9 + $0x168] sm:$0xff] %v1516_v41  ;;  %v975_v11 = vmul.f32 0.5, %v2596_v10  ;;  %v1330_v42 = vmul.f32 0.7978846, %v1266_v16  ;;  %v1136_v20 = vmul.f32 %v1072_v46, %v2655_v60  ;;  %v847_v26 = vmul.f32 %v2148_v53, %v2372_v45 }
 0x157   : > { %v1425_v21 = vadd.f32 1.0, %v1956_v22  ;;  %v1168_v17 = vmul.f32 %v1104_v23, %v2649_v31  ;;  %v1045_v49 = vmul.f32 0.044715, %v2665_v50  ;;  %v879_v48 = vmul.f32 %v2148_v53, %v2374_v38 }
 0x158   : > { %v1958_v43 = vpop.eup %1957  ;;  %1965 = vtanh.f32 %v1330_v42  ;;  %v1200_v52 = vmul.f32 %v1136_v20, %v2655_v60  ;;  %v2680_v10 = vadd.f32 %v2150_v54, %v881_v35  ;;  %v2683_v59 = vadd.f32 %v2150_v54, %v847_v26 }
 0x159   : > { %v1489_v45 = vmul.f32 %v1425_v21, %v977_v5  ;;  %v1457_v15 = vadd.f32 1.0, %v1958_v43  ;;  %v1232_v1 = vadd.f32 %v1168_v17, %v2649_v31  ;;  %v1109_v37 = vmul.f32 %v1045_v49, %v2665_v50 }
 0x15a   : > { %v1960_v47 = vpop.eup %1959  ;;  %v1007_v38 = vmul.f32 0.5, %v2609_v8  ;;  %v978_v3 = vmul.f32 0.5, %v2621_v25  ;;  %v1264_v30 = vadd.f32 %v1200_v52, %v2655_v60  ;;  %v1077_v34 = vmul.f32 0.044715, %v2680_v10 }
 0x15b   : > { %1553 = vst [vmem:[%s2287_s9 + $0x90] sm:$0xff] %v1489_v45  ;;  %v1521_v27 = vmul.f32 %v1457_v15, %v1009_v18  ;;  %v1423_v55 = vadd.f32 1.0, %v1960_v47  ;;  %v1296_v44 = vmul.f32 0.7978846, %v1232_v1  ;;  %v1173_v51 = vmul.f32 %v1109_v37, %v2665_v50 }
 0x15c   : > { %v1328_v14 = vmul.f32 0.7978846, %v1264_v30  ;;  %v1141_v62 = vmul.f32 %v1077_v34, %v2680_v10  ;;  %v1043_v29 = vmul.f32 0.044715, %v2683_v59  ;;  %v2696_v8 = vadd.f32 %v2150_v54, %v879_v48 }
 0x15d   : > { %v1962_v25 = vpop.eup %1961  ;;  %1585 = vst [vmem:[%s2287_s9 + $0x190] sm:$0xff] %v1521_v27  ;;  %v1487_v58 = vmul.f32 %v1423_v55, %v975_v11  ;;  %1967 = vtanh.f32 %v1296_v44  ;;  %v1237_v13 = vadd.f32 %v1173_v51, %v2665_v50  ;;  %v850_v63 = vmul.f32 %v2381_v0, %v2148_v53 }
 0x15e   : > { %v1455_v5 = vadd.f32 1.0, %v1962_v25  ;;  %1969 = vtanh.f32 %v1328_v14  ;;  %v1205_v56 = vmul.f32 %v1141_v62, %v2680_v10  ;;  %v1107_v6 = vmul.f32 %v1043_v29, %v2683_v59 }
 0x15f   : > { %v1964_v41 = vpop.eup %1963  ;;  %1551 = vst [vmem:[%s2287_s9 + $0x80] sm:$0xff] %v1487_v58  ;;  %v1010_v18 = vmul.f32 0.5, %v2624_v28  ;;  %v1301_v16 = vmul.f32 0.7978846, %v1237_v13  ;;  %v1075_v46 = vmul.f32 0.044715, %v2696_v8  ;;  %v2708_v23 = vadd.f32 %v2150_v54, %v850_v63 }
 0x160   : > { %v1519_v35 = vmul.f32 %v1455_v5, %v1007_v38  ;;  %v1426_v22 = vadd.f32 1.0, %v1964_v41  ;;  %v1269_v0 = vadd.f32 %v1205_v56, %v2680_v10  ;;  %v1171_v11 = vmul.f32 %v1107_v6, %v2683_v59 }
 0x161   : > { %v976_v42 = vmul.f32 0.5, %v2649_v31  ;;  %1971 = vtanh.f32 %v1301_v16  ;;  %v1139_v20 = vmul.f32 %v1075_v46, %v2696_v8  ;;  %v1046_v28 = vmul.f32 0.044715, %v2708_v23 }
 0x162   : > { %v1966_v26 = vpop.eup %1965  ;;  %1583 = vst [vmem:[%s2287_s9 + $0x180] sm:$0xff] %v1519_v35  ;;  %v1490_v21 = vmul.f32 %v1426_v22, %v978_v3  ;;  %v1333_v17 = vmul.f32 0.7978846, %v1269_v0  ;;  %v1235_v49 = vadd.f32 %v1171_v11, %v2683_v59  ;;  %v882_v48 = vmul.f32 %v2383_v4, %v2148_v53 }
 0x163   : > { %v1458_v43 = vadd.f32 1.0, %v1966_v26  ;;  %v1203_v52 = vmul.f32 %v1139_v20, %v2696_v8  ;;  %v1110_v45 = vmul.f32 %v1046_v28, %v2708_v23  ;;  %v848_v31 = vmul.f32 %v2148_v53, %v2391_v19 }
 0x164   : > { %1554 = vst [vmem:[%s2287_s9 + $0x98] sm:$0xff] %v1490_v21  ;;  %1973 = vtanh.f32 %v1333_v17  ;;  %v1299_v15 = vmul.f32 0.7978846, %v1235_v49  ;;  %v2725_v1 = vadd.f32 %v2150_v54, %v882_v48  ;;  %v880_v37 = vmul.f32 %v2148_v53, %v2393_v39 }
 0x165   : > { %v1522_v47 = vmul.f32 %v1458_v43, %v1010_v18  ;;  %v1267_v4 = vadd.f32 %v1203_v52, %v2696_v8  ;;  %v1174_v38 = vmul.f32 %v1110_v45, %v2708_v23  ;;  %v2732_v3 = vadd.f32 %v2150_v54, %v848_v31 }
 0x166   : > { %v1008_v30 = vmul.f32 0.5, %v2655_v60  ;;  %1975 = vtanh.f32 %v1299_v15  ;;  %v1078_v19 = vmul.f32 0.044715, %v2725_v1  ;;  %v2737_v34 = vadd.f32 %v2150_v54, %v880_v37 }
 0x167   : > { %v1968_v27 = vpop.eup %1967  ;;  %1586 = vst [vmem:[%s2287_s9 + $0x198] sm:$0xff] %v1522_v47  ;;  %v981_v39 = vmul.f32 0.5, %v2665_v50  ;;  %v1331_v55 = vmul.f32 0.7978846, %v1267_v4  ;;  %v1238_v44 = vadd.f32 %v1174_v38, %v2708_v23  ;;  %v1044_v51 = vmul.f32 0.044715, %v2732_v3 }
 0x168   : > { %v1970_v14 = vpop.eup %1969  ;;  %v1424_v62 = vadd.f32 1.0, %v1968_v27  ;;  %v1013_v29 = vmul.f32 0.5, %v2680_v10  ;;  %v1142_v60 = vmul.f32 %v1078_v19, %v2725_v1  ;;  %v1076_v25 = vmul.f32 0.044715, %v2737_v34 }
 0x169   : > { %v1456_v58 = vadd.f32 1.0, %v1970_v14  ;;  %1977 = vtanh.f32 %v1331_v55  ;;  %v1302_v13 = vmul.f32 0.7978846, %v1238_v44  ;;  %v1108_v50 = vmul.f32 %v1044_v51, %v2732_v3 }
 0x16a   : > { %v1488_v63 = vmul.f32 %v1424_v62, %v976_v42  ;;  %v1206_v5 = vmul.f32 %v1142_v60, %v2725_v1  ;;  %v1140_v56 = vmul.f32 %v1076_v25, %v2737_v34  ;;  %v853_v6 = vmul.f32 %v2407_v33, %v2148_v53 }
 0x16b   : > { %v1972_v10 = vpop.eup %1971  ;;  %v1520_v41 = vmul.f32 %v1456_v58, %v1008_v30  ;;  %1979 = vtanh.f32 %v1302_v13  ;;  %v1172_v18 = vmul.f32 %v1108_v50, %v2732_v3  ;;  %v885_v16 = vmul.f32 %v2409_v2, %v2148_v53 }
 0x16c   : > { %1552 = vst [vmem:[%s2287_s9 + $0x88] sm:$0xff] %v1488_v63  ;;  %v1429_v46 = vadd.f32 1.0, %v1972_v10  ;;  %v1270_v35 = vadd.f32 %v1206_v5, %v2725_v1  ;;  %v1204_v22 = vmul.f32 %v1140_v56, %v2737_v34  ;;  %v2758_v0 = vadd.f32 %v2150_v54, %v853_v6 }
 0x16d   : > { %1584 = vst [vmem:[%s2287_s9 + $0x188] sm:$0xff] %v1520_v41  ;;  %v979_v33 = vmul.f32 0.5, %v2683_v59  ;;  %v1236_v11 = vadd.f32 %v1172_v18, %v2732_v3  ;;  %v2764_v42 = vadd.f32 %v2150_v54, %v885_v16  ;;  %v851_v2 = vmul.f32 %v2148_v53, %v2413_v57 }
 0x16e   : > { %v1974_v20 = vpop.eup %1973  ;;  %v1493_v28 = vmul.f32 %v1429_v46, %v981_v39  ;;  %v1011_v26 = vmul.f32 0.5, %v2696_v8  ;;  %v1334_v21 = vmul.f32 0.7978846, %v1270_v35  ;;  %v1268_v17 = vadd.f32 %v1204_v22, %v2737_v34 }
 0x16f   : > { %v1461_v49 = vadd.f32 1.0, %v1974_v20  ;;  %v1300_v48 = vmul.f32 0.7978846, %v1236_v11  ;;  %v1049_v43 = vmul.f32 0.044715, %v2758_v0  ;;  %v883_v59 = vmul.f32 %v2148_v53, %v2415_v40 }
 0x170   : > { %v1976_v52 = vpop.eup %1975  ;;  %1557 = vst [vmem:[%s2287_s9 + $0xb0] sm:$0xff] %v1493_v28  ;;  %1981 = vtanh.f32 %v1334_v21  ;;  %v1332_v45 = vmul.f32 0.7978846, %v1268_v17  ;;  %v1081_v57 = vmul.f32 0.044715, %v2764_v42  ;;  %v2776_v31 = vadd.f32 %v2150_v54, %v851_v2 }
 0x171   : > { %v1525_v8 = vmul.f32 %v1461_v49, %v1013_v29  ;;  %v1427_v15 = vadd.f32 1.0, %v1976_v52  ;;  %1983 = vtanh.f32 %v1300_v48  ;;  %v1113_v37 = vmul.f32 %v1049_v43, %v2758_v0 }
 0x172   : > { %v982_v47 = vmul.f32 0.5, %v2708_v23  ;;  %1985 = vtanh.f32 %v1332_v45  ;;  %v1145_v40 = vmul.f32 %v1081_v57, %v2764_v42  ;;  %v1047_v4 = vmul.f32 0.044715, %v2776_v31 }
 0x173   : > { %v1978_v38 = vpop.eup %1977  ;;  %1589 = vst [vmem:[%s2287_s9 + $0x1b0] sm:$0xff] %v1525_v8  ;;  %v1491_v30 = vmul.f32 %v1427_v15, %v979_v33  ;;  %v1177_v19 = vmul.f32 %v1113_v37, %v2758_v0  ;;  %v2785_v27 = vadd.f32 %v2150_v54, %v883_v59  ;;  %v854_v39 = vmul.f32 %v2423_v12, %v2148_v53 }
 0x174   : > { %v1459_v55 = vadd.f32 1.0, %v1978_v38  ;;  %v1209_v44 = vmul.f32 %v1145_v40, %v2764_v42  ;;  %v1111_v23 = vmul.f32 %v1047_v4, %v2776_v31  ;;  %v886_v51 = vmul.f32 %v2425_v36, %v2148_v53 }
 0x175   : > { %v1980_v14 = vpop.eup %1979  ;;  %1555 = vst [vmem:[%s2287_s9 + $0xa0] sm:$0xff] %v1491_v30  ;;  %v1014_v62 = vmul.f32 0.5, %v2725_v1  ;;  %v1241_v29 = vadd.f32 %v1177_v19, %v2758_v0  ;;  %v1079_v60 = vmul.f32 0.044715, %v2785_v27  ;;  %v2798_v25 = vadd.f32 %v2150_v54, %v854_v39  ;;  %v2951_v19 = vld [vmem:[#allocation2_spill] sm:$0xff] }
 0x176   : > { %v1523_v12 = vmul.f32 %v1459_v55, %v1011_v26  ;;  %v1430_v58 = vadd.f32 1.0, %v1980_v14  ;;  %v1273_v13 = vadd.f32 %v1209_v44, %v2764_v42  ;;  %v1175_v50 = vmul.f32 %v1111_v23, %v2776_v31 }
 0x177   : > { %v980_v36 = vmul.f32 0.5, %v2732_v3  ;;  %v1305_v63 = vmul.f32 0.7978846, %v1241_v29  ;;  %v1143_v5 = vmul.f32 %v1079_v60, %v2785_v27  ;;  %v1050_v1 = vmul.f32 0.044715, %v2798_v25 }
 0x178   : > { %1587 = vst [vmem:[%s2287_s9 + $0x1a0] sm:$0xff] %v1523_v12  ;;  %v1494_v56 = vmul.f32 %v1430_v58, %v982_v47  ;;  %v1337_v6 = vmul.f32 0.7978846, %v1273_v13  ;;  %v1239_v10 = vadd.f32 %v1175_v50, %v2776_v31  ;;  %v2808_v41 = vadd.f32 %v2150_v54, %v886_v51  ;;  %v2952_v58 = vld [vmem:[#allocation3_spill] sm:$0xff] }
 0x179   : > { %1987 = vtanh.f32 %v1305_v63  ;;  %v1207_v18 = vmul.f32 %v1143_v5, %v2785_v27  ;;  %v1114_v16 = vmul.f32 %v1050_v1, %v2798_v25  ;;  %v852_v3 = vmul.f32 %v2148_v53, %v2434_v9 }
 0x17a   : > { %v1982_v46 = vpop.eup %1981  ;;  %1558 = vst [vmem:[%s2287_s9 + $0xb8] sm:$0xff] %v1494_v56  ;;  %v1012_v35 = vmul.f32 0.5, %v2737_v34  ;;  %1989 = vtanh.f32 %v1337_v6  ;;  %v1303_v22 = vmul.f32 0.7978846, %v1239_v10  ;;  %v1082_v33 = vmul.f32 0.044715, %v2808_v41 }
 0x17b   : > { %v1984_v11 = vpop.eup %1983  ;;  %v1462_v2 = vadd.f32 1.0, %v1982_v46  ;;  %v1271_v20 = vadd.f32 %v1207_v18, %v2785_v27  ;;  %v1178_v28 = vmul.f32 %v1114_v16, %v2798_v25  ;;  %v2820_v26 = vadd.f32 %v2150_v54, %v852_v3 }
 0x17c   : > { %v1986_v21 = vpop.eup %1985  ;;  %v1428_v9 = vadd.f32 1.0, %v1984_v11  ;;  %1991 = vtanh.f32 %v1303_v22  ;;  %v1146_v34 = vmul.f32 %v1082_v33, %v2808_v41  ;;  %v884_v17 = vmul.f32 %v2148_v53, %v2436_v24 }
 0x17d   : > { %v1526_v49 = vmul.f32 %v1462_v2, %v1014_v62  ;;  %v1460_v48 = vadd.f32 1.0, %v1986_v21  ;;  %v1335_v43 = vmul.f32 0.7978846, %v1271_v20  ;;  %v1242_v59 = vadd.f32 %v1178_v28, %v2798_v25 }
 0x17e   : > { %v1492_v52 = vmul.f32 %v1428_v9, %v980_v36  ;;  %v1210_v45 = vmul.f32 %v1146_v34, %v2808_v41  ;;  %v1048_v57 = vmul.f32 0.044715, %v2820_v26  ;;  %v2830_v37 = vadd.f32 %v2150_v54, %v884_v17 }
 0x17f   : > { %1590 = vst [vmem:[%s2287_s9 + $0x1b8] sm:$0xff] %v1526_v49  ;;  %v1524_v8 = vmul.f32 %v1460_v48, %v1012_v35  ;;  %1993 = vtanh.f32 %v1335_v43  ;;  %v1306_v15 = vmul.f32 0.7978846, %v1242_v59  ;;  %v857_v40 = vmul.f32 %v2457_v7, %v2148_v53 }
 0x180   : > { %1556 = vst [vmem:[%s2287_s9 + $0xa8] sm:$0xff] %v1492_v52  ;;  %v1274_v24 = vadd.f32 %v1210_v45, %v2808_v41  ;;  %v1112_v47 = vmul.f32 %v1048_v57, %v2820_v26  ;;  %v889_v4 = vmul.f32 %v2466_v61, %v2148_v53  ;;  %v985_v38 = vmul.f32 0.5, %v2758_v0 }
 0x181   : > { %1588 = vst [vmem:[%s2287_s9 + $0x1a8] sm:$0xff] %v1524_v8  ;;  %1995 = vtanh.f32 %v1306_v15  ;;  %v1080_v30 = vmul.f32 0.044715, %v2830_v37  ;;  %v855_v39 = vmul.f32 %v2148_v53, %v2951_v19  ;;  %v2846_v23 = vadd.f32 %v2150_v54, %v857_v40  ;;  %v2955_v19 = vld [vmem:[#allocation6_spill] sm:$0xff] }
 0x182   : > { %v1338_v55 = vmul.f32 0.7978846, %v1274_v24  ;;  %v1176_v44 = vmul.f32 %v1112_v47, %v2820_v26  ;;  %v2849_v7 = vadd.f32 %v2150_v54, %v889_v4  ;;  %v1017_v61 = vmul.f32 0.5, %v2764_v42  ;;  %v2954_v47 = vld [vmem:[#allocation5_spill] sm:$0xff] }
 0x183   : > { %v1988_v51 = vpop.eup %1987  ;;  %v983_v0 = vmul.f32 0.5, %v2776_v31  ;;  %v1144_v14 = vmul.f32 %v1080_v30, %v2830_v37  ;;  %v2855_v62 = vadd.f32 %v2150_v54, %v855_v39  ;;  %v887_v13 = vmul.f32 %v2148_v53, %v2952_v58  ;;  %v2953_v31 = vld [vmem:[#allocation4_spill] sm:$0xff] }
 0x184   : > { %v1990_v29 = vpop.eup %1989  ;;  %v1433_v60 = vadd.f32 1.0, %v1988_v51  ;;  %1997 = vtanh.f32 %v1338_v55  ;;  %v1240_v12 = vadd.f32 %v1176_v44, %v2820_v26  ;;  %v1053_v42 = vmul.f32 0.044715, %v2846_v23 }
 0x185   : > { %v1465_v50 = vadd.f32 1.0, %v1990_v29  ;;  %v1208_v36 = vmul.f32 %v1144_v14, %v2830_v37  ;;  %v858_v63 = vmul.f32 %v2953_v31, %v2148_v53  ;;  %v1015_v56 = vmul.f32 0.5, %v2785_v27 }
 0x186   : > { %v1992_v5 = vpop.eup %1991  ;;  %v1497_v1 = vmul.f32 %v1433_v60, %v985_v38  ;;  %v1304_v6 = vmul.f32 0.7978846, %v1240_v12  ;;  %v1085_v10 = vmul.f32 0.044715, %v2849_v7  ;;  %v1117_v46 = vmul.f32 %v1053_v42, %v2846_v23 }
 0x187   : > { %v1529_v18 = vmul.f32 %v1465_v50, %v1017_v61  ;;  %v1431_v16 = vadd.f32 1.0, %v1992_v5  ;;  %v1272_v3 = vadd.f32 %v1208_v36, %v2830_v37  ;;  %v1051_v22 = vmul.f32 0.044715, %v2855_v62 }
 0x188   : > { %1561 = vst [vmem:[%s2287_s9 + $0xd0] sm:$0xff] %v1497_v1  ;;  %1999 = vtanh.f32 %v1304_v6  ;;  %v1149_v35 = vmul.f32 %v1085_v10, %v2849_v7  ;;  %v2872_v33 = vadd.f32 %v2150_v54, %v887_v13  ;;  %v1181_v20 = vmul.f32 %v1117_v46, %v2846_v23 }
 0x189   : > { %v1994_v27 = vpop.eup %1993  ;;  %1593 = vst [vmem:[%s2287_s9 + $0x1d0] sm:$0xff] %v1529_v18  ;;  %v1495_v11 = vmul.f32 %v1431_v16, %v983_v0  ;;  %v1336_v2 = vmul.f32 0.7978846, %v1272_v3  ;;  %v2877_v28 = vadd.f32 %v2150_v54, %v858_v63  ;;  %v986_v9 = vmul.f32 0.5, %v2798_v25 }
 0x18a   : > { %v1463_v21 = vadd.f32 1.0, %v1994_v27  ;;  %v1213_v34 = vmul.f32 %v1149_v35, %v2849_v7  ;;  %v1115_v17 = vmul.f32 %v1051_v22, %v2855_v62  ;;  %v1018_v48 = vmul.f32 0.5, %v2808_v41 }
 0x18b   : > { %v1996_v49 = vpop.eup %1995  ;;  %1559 = vst [vmem:[%s2287_s9 + $0xc0] sm:$0xff] %v1495_v11  ;;  %2001 = vtanh.f32 %v1336_v2  ;;  %v1245_v43 = vadd.f32 %v1181_v20, %v2846_v23  ;;  %v1083_v59 = vmul.f32 0.044715, %v2872_v33  ;;  %v1054_v24 = vmul.f32 0.044715, %v2877_v28 }
 0x18c   : > { %v1527_v52 = vmul.f32 %v1463_v21, %v1015_v56  ;;  %v1434_v45 = vadd.f32 1.0, %v1996_v49  ;;  %v1277_v57 = vadd.f32 %v1213_v34, %v2849_v7  ;;  %v1179_v25 = vmul.f32 %v1115_v17, %v2855_v62 }
 0x18d   : > { %v1309_v8 = vmul.f32 0.7978846, %v1245_v43  ;;  %v1147_v15 = vmul.f32 %v1083_v59, %v2872_v33  ;;  %v890_v41 = vmul.f32 %v2954_v47, %v2148_v53  ;;  %v856_v39 = vmul.f32 %v2148_v53, %v2955_v19 }
 0x18e   : > { %v1998_v40 = vpop.eup %1997  ;;  %1591 = vst [vmem:[%s2287_s9 + $0x1c0] sm:$0xff] %v1527_v52  ;;  %v1498_v4 = vmul.f32 %v1434_v45, %v986_v9  ;;  %v1341_v38 = vmul.f32 0.7978846, %v1277_v57  ;;  %v1243_v30 = vadd.f32 %v1179_v25, %v2855_v62  ;;  %v1118_v51 = vmul.f32 %v1054_v24, %v2877_v28 }
 0x18f   : > { %v1466_v55 = vadd.f32 1.0, %v1998_v40  ;;  %2003 = vtanh.f32 %v1309_v8  ;;  %v1211_v44 = vmul.f32 %v1147_v15, %v2872_v33  ;;  %v2900_v0 = vadd.f32 %v2150_v54, %v890_v41 }
 0x190   : > { %1562 = vst [vmem:[%s2287_s9 + $0xd8] sm:$0xff] %v1498_v4  ;;  %2005 = vtanh.f32 %v1341_v38  ;;  %v1307_v61 = vmul.f32 0.7978846, %v1243_v30  ;;  %v2903_v14 = vadd.f32 %v2150_v54, %v856_v39  ;;  %v1182_v12 = vmul.f32 %v1118_v51, %v2877_v28 }
 0x191   : > { %v1530_v29 = vmul.f32 %v1466_v55, %v1018_v48  ;;  %v1275_v60 = vadd.f32 %v1211_v44, %v2872_v33  ;;  %v888_v58 = vmul.f32 %v2148_v53, %v2489_v32  ;;  %v984_v50 = vmul.f32 0.5, %v2820_v26 }
 0x192   : > { %v2000_v13 = vpop.eup %1999  ;;  %2007 = vtanh.f32 %v1307_v61  ;;  %v1086_v36 = vmul.f32 0.044715, %v2900_v0  ;;  %v1246_v63 = vadd.f32 %v1182_v12, %v2877_v28  ;;  %v1052_v5 = vmul.f32 0.044715, %v2903_v14 }
 0x193   : > { %1594 = vst [vmem:[%s2287_s9 + $0x1d8] sm:$0xff] %v1530_v29  ;;  %v1432_v42 = vadd.f32 1.0, %v2000_v13  ;;  %v1339_v31 = vmul.f32 0.7978846, %v1275_v60  ;;  %v956_v56 = vadd.f32 %v2150_v54, %v888_v58  ;;  %v1016_v10 = vmul.f32 0.5, %v2830_v37 }
 0x194   : > { %v1150_v1 = vmul.f32 %v1086_v36, %v2900_v0  ;;  %v1310_v32 = vmul.f32 0.7978846, %v1246_v63  ;;  %v1116_v26 = vmul.f32 %v1052_v5, %v2903_v14  ;;  %v989_v37 = vmul.f32 0.5, %v2846_v23 }
 0x195   : > { %v2002_v6 = vpop.eup %2001  ;;  %v1496_v53 = vmul.f32 %v1432_v42, %v984_v50  ;;  %2009 = vtanh.f32 %v1339_v31  ;;  %v1084_v3 = vmul.f32 0.044715, %v956_v56  ;;  %v1021_v34 = vmul.f32 0.5, %v2849_v7 }
 0x196   : > { %v1464_v18 = vadd.f32 1.0, %v2002_v6  ;;  %v1214_v16 = vmul.f32 %v1150_v1, %v2900_v0  ;;  %2011 = vtanh.f32 %v1310_v32  ;;  %v1180_v46 = vmul.f32 %v1116_v26, %v2903_v14 }
 0x197   : > { %1560 = vst [vmem:[%s2287_s9 + $0xc8] sm:$0xff] %v1496_v53  ;;  %v1148_v22 = vmul.f32 %v1084_v3, %v956_v56  ;;  %v987_v45 = vmul.f32 0.5, %v2855_v62  ;;  %v1019_v7 = vmul.f32 0.5, %v2872_v33  ;;  %v990_v41 = vmul.f32 0.5, %v2877_v28 }
 0x198   : > { %v1528_v35 = vmul.f32 %v1464_v18, %v1016_v10  ;;  %v1278_v54 = vadd.f32 %v1214_v16, %v2900_v0  ;;  %v1244_v11 = vadd.f32 %v1180_v46, %v2903_v14  ;;  %v1022_v30 = vmul.f32 0.5, %v2900_v0 }
 0x199   : > { %v2004_v27 = vpop.eup %2003  ;;  %v1212_v9 = vmul.f32 %v1148_v22, %v956_v56  ;;  %v988_v33 = vmul.f32 0.5, %v2903_v14  ;;  %v1020_v61 = vmul.f32 0.5, %v956_v56 }
 0x19a   : > { %v2006_v2 = vpop.eup %2005  ;;  %1592 = vst [vmem:[%s2287_s9 + $0x1c8] sm:$0xff] %v1528_v35  ;;  %v1437_v20 = vadd.f32 1.0, %v2004_v27  ;;  %v1342_v21 = vmul.f32 0.7978846, %v1278_v54  ;;  %v1308_v49 = vmul.f32 0.7978846, %v1244_v11 }
 0x19b   : > { %v1469_v17 = vadd.f32 1.0, %v2006_v2  ;;  %v1276_v59 = vadd.f32 %v1212_v9, %v956_v56 }
 0x19c   : > { %v2008_v48 = vpop.eup %2007  ;;  %v1501_v43 = vmul.f32 %v1437_v20, %v989_v37  ;;  %2013 = vtanh.f32 %v1342_v21 }
 0x19d   : > { %v1533_v52 = vmul.f32 %v1469_v17, %v1021_v34  ;;  %v1435_v57 = vadd.f32 1.0, %v2008_v48  ;;  %2015 = vtanh.f32 %v1308_v49  ;;  %v1340_v23 = vmul.f32 0.7978846, %v1276_v59 }
 0x19e   : > { %1565 = vst [vmem:[%s2287_s9 + $0xf0] sm:$0xff] %v1501_v43 }
 0x19f   : > { %v2010_v25 = vpop.eup %2009  ;;  %1597 = vst [vmem:[%s2287_s9 + $0x1f0] sm:$0xff] %v1533_v52  ;;  %v1499_v8 = vmul.f32 %v1435_v57, %v987_v45  ;;  %2017 = vtanh.f32 %v1340_v23 }
 0x1a0   : > { %v1467_v15 = vadd.f32 1.0, %v2010_v25  ;;  %v2012_v24 = vpop.eup %2011 }
 0x1a1   : > { %1563 = vst [vmem:[%s2287_s9 + $0xe0] sm:$0xff] %v1499_v8  ;;  %v1438_v62 = vadd.f32 1.0, %v2012_v24 }
 0x1a2   : > { %v1531_v47 = vmul.f32 %v1467_v15, %v1019_v7 }
 0x1a3   : > { %v1502_v40 = vmul.f32 %v1438_v62, %v990_v41 }
 0x1a4   : > { %1595 = vst [vmem:[%s2287_s9 + $0x1e0] sm:$0xff] %v1531_v47 }
 0x1a5   : > { %1566 = vst [vmem:[%s2287_s9 + $0xf8] sm:$0xff] %v1502_v40 }
 0x1a6   : > { %v2014_v4 = vpop.eup %2013 }
 0x1a7   : > { %v2016_v38 = vpop.eup %2015  ;;  %v1470_v19 = vadd.f32 1.0, %v2014_v4 }
 0x1a8   : > { %v1436_v39 = vadd.f32 1.0, %v2016_v38 }
 0x1a9   : > { %v1534_v55 = vmul.f32 %v1470_v19, %v1022_v30  ;;  %v2018_v44 = vpop.eup %2017 }
 0x1aa   : > { %v1500_v51 = vmul.f32 %v1436_v39, %v988_v33  ;;  %v1468_v28 = vadd.f32 1.0, %v2018_v44 }
 0x1ab   : > { %1598 = vst [vmem:[%s2287_s9 + $0x1f8] sm:$0xff] %v1534_v55 }
 0x1ac   : > { %1564 = vst [vmem:[%s2287_s9 + $0xe8] sm:$0xff] %v1500_v51  ;;  %v1532_v29 = vmul.f32 %v1468_v28, %v1020_v61 }
 0x1ae   : > { %1596 = vst [vmem:[%s2287_s9 + $0x1e8] sm:$0xff] %v1532_v29 }
 0x1af PF: > { %s13_s12 = sadd.s32 1, %s2025_s12  }
 0x1b0   : > { %p10_p4 = scmp.ge.s32.totalorder %s13_s12, 4  }
 0x1b2   :  { %12 = sbr.rel (!%p10_p4) target bundleno = 1 (0x1), region = 62 }

</bundles_post_ra>
